<compile_context>
chip_gen: v7x
topology: tpu7x:2x2x1
jax: 0.10.0
libtpu: 0.0.40
codegen_flags: <defaults>
</compile_context>

<pallas_src>
import jax
import jax.numpy as jnp
import numpy as np
from jax.experimental import pallas as pl
from jax.experimental.pallas import tpu as pltpu

KSIZE = 33                       # convBNRelu hard-codes kernel_size = 33
PAD = (KSIZE - 1) // 2           # 16
NEG_SLOPE = 0.01                 # nn.LeakyReLU default
BN_EPS = 1e-5
_HALO_OFF = 128                  # center of the in-VMEM window starts lane-aligned


def _choose_length_tile(L):
    for cand in (512, 384, 256, 128):
        if L % cand == 0:
            return cand
    return L                     # TODO(synk): ragged last tile for odd L


def _make_kernel(C, Cout, LT, residual, use_mxu, c_chunk):
    def kernel(xc_ref, xl_ref, xr_ref, wdw_ref, b1_ref, wpw_ref, b2_ref,
               o_ref, xwin_ref):
        # Assemble the haloed window in VMEM: [ ... | left16 | center | right16 ]
        # (center store is 128-lane aligned; halo stores are tiny masked stores).
        xwin_ref[:, _HALO_OFF - PAD:_HALO_OFF] = xl_ref[...]
        xwin_ref[:, _HALO_OFF:_HALO_OFF + LT] = xc_ref[...]
        xwin_ref[:, _HALO_OFF + LT:_HALO_OFF + LT + PAD] = xr_ref[...]

        out_acc = jnp.zeros((Cout, LT), jnp.float32)
        for c0 in range(0, C, c_chunk):
            cc = min(c_chunk, C - c0)

            # Depthwise conv (kernel=33, stride=1) as 33 shifted multiply-adds
            # on the VPU.  BN1 scale is already folded into wdw on the host.
            acc = jnp.zeros((cc, LT), jnp.float32)
            for k in range(KSIZE):
                lo = _HALO_OFF - PAD + k
                acc = acc + (wdw_ref[c0:c0 + cc, k:k + 1] *
                             xwin_ref[c0:c0 + cc, lo:lo + LT])

            # BN1 shift + LeakyReLU.
            h = acc + b1_ref[c0:c0 + cc, :]
            h = jnp.where(h >= 0, h, NEG_SLOPE * h)

            # Pointwise Conv1d(kernel=1): MXU matmul for large C, VPU channel
            # sum for tiny C (the systolic array would be nearly empty).
            if use_mxu:
                out_acc = out_acc + jnp.dot(wpw_ref[:, c0:c0 + cc], h,
                                            preferred_element_type=jnp.float32)
            else:
                for c in range(cc):
                    out_acc = out_acc + (wpw_ref[:, c0 + c:c0 + c + 1] *
                                         h[c:c + 1, :])

        # BN2 shift (scale folded into wpw) + optional residual from the same
        # already-resident input tile.
        out = out_acc + b2_ref[...]
        if residual:
            out = out + xc_ref[...]
        o_ref[...] = out.astype(o_ref.dtype)

    return kernel


def residual_bottleneck_forward(x, wdw, bn1, wpw, bn2, residual):
    """x: (N, C, L) f32.  wdw: (C, K) depthwise weights.  wpw: (Cout, C)."""
    N, C, L = x.shape
    Cout = wpw.shape[0]
    if residual:
        assert C == Cout, "residual path requires C == Cout"

    LT = _choose_length_tile(L)
    assert LT >= PAD, "length tile must cover the conv halo"
    nLT = L // LT

    # ---- host-side (cheap, exact): fold BN scales into the conv weights ----
    g1, be1, m1, v1 = bn1
    g2, be2, m2, v2 = bn2
    s1 = g1 / jnp.sqrt(v1 + BN_EPS)
    s2 = g2 / jnp.sqrt(v2 + BN_EPS)
    wdw_eff = (wdw * s1[:, None]).astype(jnp.float32)
    wpw_eff = (wpw * s2[:, None]).astype(jnp.float32)
    b1 = (be1 - m1 * s1).reshape(C, 1).astype(jnp.float32)
    b2 = (be2 - m2 * s2).reshape(Cout, 1).astype(jnp.float32)

    # ---- tiny per-tile halo arrays (replace the old full padded copy) ----
    xt = x.reshape(N, C, nLT, LT)
    zero = jnp.zeros((N, C, 1, PAD), x.dtype)
    left = jnp.concatenate([zero, xt[:, :, :nLT - 1, LT - PAD:]], axis=2)
    right = jnp.concatenate([xt[:, :, 1:, :PAD], zero], axis=2)
    left = jnp.transpose(left, (0, 2, 1, 3)).reshape(N * nLT, C, PAD)
    right = jnp.transpose(right, (0, 2, 1, 3)).reshape(N * nLT, C, PAD)

    use_mxu = C >= 32
    c_chunk = min(C, 64) if use_mxu else min(C, 32)

    kernel = _make_kernel(C, Cout, LT, residual, use_mxu, c_chunk)

    win_w = _HALO_OFF + LT + PAD
    # Explicit VMEM budget so the same kernel stays inside v7x's 64 MiB.
    bytes_per_step = 4 * (2 * C * LT + 4 * C * PAD + 2 * Cout * LT + C * win_w
                          + 2 * (C * KSIZE + Cout * C + C + Cout))
    vmem_limit = int(min(32 * 1024 * 1024,
                         max(16 * 1024 * 1024, 4 * bytes_per_step)))

    cost = pl.CostEstimate(
        flops=2 * N * L * C * KSIZE + 2 * N * L * Cout * C + 3 * N * L * Cout,
        transcendentals=0,
        bytes_accessed=4 * (N * C * L + 2 * N * nLT * C * PAD + N * Cout * L
                            + C * KSIZE + Cout * C + C + Cout))

    return pl.pallas_call(
        kernel,
        out_shape=jax.ShapeDtypeStruct((N, Cout, L), x.dtype),
        grid_spec=pltpu.PrefetchScalarGridSpec(
            num_scalar_prefetch=0,
            grid=(N, nLT),
            in_specs=[
                pl.BlockSpec((None, C, LT), lambda n, t: (n, 0, t)),         # x tile
                pl.BlockSpec((None, C, PAD), lambda n, t: (n * nLT + t, 0, 0)),  # left halo
                pl.BlockSpec((None, C, PAD), lambda n, t: (n * nLT + t, 0, 0)),  # right halo
                pl.BlockSpec((C, KSIZE), lambda n, t: (0, 0)),               # depthwise w
                pl.BlockSpec((C, 1), lambda n, t: (0, 0)),                   # BN1 shift
                pl.BlockSpec((Cout, C), lambda n, t: (0, 0)),                # pointwise w
                pl.BlockSpec((Cout, 1), lambda n, t: (0, 0)),                # BN2 shift
            ],
            out_specs=pl.BlockSpec((None, Cout, LT), lambda n, t: (n, 0, t)),
            scratch_shapes=[pltpu.VMEM((C, win_w), jnp.float32)],
        ),
        compiler_params=pltpu.CompilerParams(
            dimension_semantics=("parallel", "parallel"),
            vmem_limit_bytes=vmem_limit),
        cost_estimate=cost,
    )(x, left, right, wdw_eff, b1, wpw_eff, b2)


def _reference(x, wdw, bn1, wpw, bn2, residual):
    """Pure-JAX reference (matches PyTorch eval() forward)."""
    g1, be1, m1, v1 = bn1
    g2, be2, m2, v2 = bn2
    s1 = g1 / jnp.sqrt(v1 + BN_EPS)
    sh1 = be1 - m1 * s1
    s2 = g2 / jnp.sqrt(v2 + BN_EPS)
    sh2 = be2 - m2 * s2

    y = jax.lax.conv_general_dilated(
        x, wdw[:, None, :],                       # (C, 1, K) depthwise
        window_strides=(1,), padding=[(PAD, PAD)],
        feature_group_count=x.shape[1],
        dimension_numbers=("NCH", "OIH", "NCH"))
    y = y * s1[None, :, None] + sh1[None, :, None]
    y = jnp.where(y >= 0, y, NEG_SLOPE * y)
    z = jnp.einsum("oc,ncl->nol", wpw, y)
    z = z * s2[None, :, None] + sh2[None, :, None]
    return x + z if residual else z


if __name__ == "__main__":
    configs = [
        # residual + VPU pointwise path, 3 length tiles (zero / real halos)
        dict(N=2, C=8, Cout=8, L=1536),
        # non-residual + MXU pointwise path, single length tile
        dict(N=2, C=64, Cout=48, L=512),
    ]

    key = jax.random.PRNGKey(0)
    for cfg in configs:
        N, C, Cout, L = cfg["N"], cfg["C"], cfg["Cout"], cfg["L"]
        residual = (C == Cout)

        key, *ks = jax.random.split(key, 10)
        x = jax.random.normal(ks[0], (N, C, L), jnp.float32)

        # Depthwise Conv1d weight: (C, 1, K) in torch -> (C, K) here.
        wdw = jax.random.normal(ks[1], (C, KSIZE), jnp.float32) * 0.1
        # Pointwise Conv1d weight: (Cout, C, 1) in torch -> (Cout, C) here.
        wpw = jax.random.normal(ks[2], (Cout, C), jnp.float32) * 0.3

        bn1 = (1.0 + 0.1 * jax.random.normal(ks[3], (C,), jnp.float32),      # gamma
               0.1 * jax.random.normal(ks[4], (C,), jnp.float32),            # beta
               0.05 * jax.random.normal(ks[5], (C,), jnp.float32),           # running_mean
               jnp.abs(jax.random.normal(ks[6], (C,), jnp.float32)) + 0.5)   # running_var
        bn2 = (1.0 + 0.1 * jax.random.normal(ks[7], (Cout,), jnp.float32),
               0.1 * jax.random.normal(ks[8], (Cout,), jnp.float32),
               jnp.zeros((Cout,), jnp.float32),
               jnp.ones((Cout,), jnp.float32))

        out = jax.block_until_ready(
            residual_bottleneck_forward(x, wdw, bn1, wpw, bn2, residual))
        ref = _reference(x, wdw, bn1, wpw, bn2, residual)
        np.testing.assert_allclose(np.asarray(out), np.asarray(ref),
                                   rtol=2e-3, atol=2e-3)

    print("KERNEL_OK")
</pallas_src>

<mosaic_0001>
module attributes {stable_mosaic.version = 11 : i64} {
  func.func @kernel(%arg0: i32, %arg1: i32, %arg2: memref<1x8x512xf32, #tpu.memory_space<vmem>>, %arg3: memref<1x8x16xf32, #tpu.memory_space<vmem>>, %arg4: memref<1x8x16xf32, #tpu.memory_space<vmem>>, %arg5: memref<8x33xf32, #tpu.memory_space<vmem>>, %arg6: memref<8x1xf32, #tpu.memory_space<vmem>>, %arg7: memref<8x8xf32, #tpu.memory_space<vmem>>, %arg8: memref<8x1xf32, #tpu.memory_space<vmem>>, %arg9: memref<1x8x512xf32, #tpu.memory_space<vmem>>, %arg10: memref<8x656xf32, #tpu.memory_space<vmem>>) attributes {dimension_semantics = [#tpu.dimension_semantics<parallel>, #tpu.dimension_semantics<parallel>], iteration_bounds = array<i64: 2, 3>, scalar_prefetch = 0 : i64, scratch_operands = 1 : i64, tpu.core_type = #tpu.core_type<tc>, window_params = [{transform_indices = @transform_0, window_bounds = array<i64: 1, 8, 512>}, {transform_indices = @transform_1, window_bounds = array<i64: 1, 8, 16>}, {transform_indices = @transform_2, window_bounds = array<i64: 1, 8, 16>}, {pipeline_mode = #tpu.pipeline_mode<synchronous>, transform_indices = @transform_3, window_bounds = array<i64: 8, 33>}, {pipeline_mode = #tpu.pipeline_mode<synchronous>, transform_indices = @transform_4, window_bounds = array<i64: 8, 1>}, {pipeline_mode = #tpu.pipeline_mode<synchronous>, transform_indices = @transform_5, window_bounds = array<i64: 8, 8>}, {pipeline_mode = #tpu.pipeline_mode<synchronous>, transform_indices = @transform_6, window_bounds = array<i64: 8, 1>}, {transform_indices = @transform_7, window_bounds = array<i64: 1, 8, 512>}]} {
    %c0 = arith.constant 0 : index
    %c0_0 = arith.constant 0 : index
    %c0_1 = arith.constant 0 : index
    %0 = vector.load %arg3[%c0, %c0_0, %c0_1] : memref<1x8x16xf32, #tpu.memory_space<vmem>>, vector<1x8x16xf32>
    %1 = vector.shape_cast %0 : vector<1x8x16xf32> to vector<8x16xf32>
    %c0_2 = arith.constant 0 : index
    %c112 = arith.constant 112 : index
    %2 = vector.load %arg10[%c0_2, %c112] : memref<8x656xf32, #tpu.memory_space<vmem>>, vector<8x16xf32>
    tpu.vector_store %arg10[%c0_2, %c112], %1 {strides = array<i32>} : memref<8x656xf32, #tpu.memory_space<vmem>>, vector<8x16xf32>,
    %c0_3 = arith.constant 0 : index
    %c0_4 = arith.constant 0 : index
    %c0_5 = arith.constant 0 : index
    %3 = vector.load %arg2[%c0_3, %c0_4, %c0_5] : memref<1x8x512xf32, #tpu.memory_space<vmem>>, vector<1x8x512xf32>
    %4 = vector.shape_cast %3 : vector<1x8x512xf32> to vector<8x512xf32>
    %c0_6 = arith.constant 0 : index
    %c128 = arith.constant 128 : index
    %5 = vector.load %arg10[%c0_6, %c128] : memref<8x656xf32, #tpu.memory_space<vmem>>, vector<8x512xf32>
    tpu.vector_store %arg10[%c0_6, %c128], %4 {strides = array<i32>} : memref<8x656xf32, #tpu.memory_space<vmem>>, vector<8x512xf32>,
    %c0_7 = arith.constant 0 : index
    %c0_8 = arith.constant 0 : index
    %c0_9 = arith.constant 0 : index
    %6 = vector.load %arg4[%c0_7, %c0_8, %c0_9] : memref<1x8x16xf32, #tpu.memory_space<vmem>>, vector<1x8x16xf32>
    %7 = vector.shape_cast %6 : vector<1x8x16xf32> to vector<8x16xf32>
    %c0_10 = arith.constant 0 : index
    %c640 = arith.constant 640 : index
    %8 = vector.load %arg10[%c0_10, %c640] : memref<8x656xf32, #tpu.memory_space<vmem>>, vector<8x16xf32>
    tpu.vector_store %arg10[%c0_10, %c640], %7 {strides = array<i32>} : memref<8x656xf32, #tpu.memory_space<vmem>>, vector<8x16xf32>,
    %cst = arith.constant 0.000000e+00 : f32
    %9 = vector.broadcast %cst : f32 to vector<8x512xf32>
    %cst_11 = arith.constant 0.000000e+00 : f32
    %10 = vector.broadcast %cst_11 : f32 to vector<8x512xf32>
    %c0_12 = arith.constant 0 : index
    %c0_13 = arith.constant 0 : index
    %11 = vector.load %arg5[%c0_12, %c0_13] : memref<8x33xf32, #tpu.memory_space<vmem>>, vector<8x1xf32>
    %c0_14 = arith.constant 0 : index
    %c112_15 = arith.constant 112 : index
    %12 = vector.load %arg10[%c0_14, %c112_15] : memref<8x656xf32, #tpu.memory_space<vmem>>, vector<8x512xf32>
    %13 = vector.broadcast %11 : vector<8x1xf32> to vector<8x512xf32>
    %14 = arith.mulf %13, %12 : vector<8x512xf32>
    %15 = arith.addf %10, %14 : vector<8x512xf32>
    %c0_16 = arith.constant 0 : index
    %c1 = arith.constant 1 : index
    %16 = vector.load %arg5[%c0_16, %c1] : memref<8x33xf32, #tpu.memory_space<vmem>>, vector<8x1xf32>
    %c0_17 = arith.constant 0 : index
    %c113 = arith.constant 113 : index
    %17 = vector.load %arg10[%c0_17, %c113] : memref<8x656xf32, #tpu.memory_space<vmem>>, vector<8x512xf32>
    %18 = vector.broadcast %16 : vector<8x1xf32> to vector<8x512xf32>
    %19 = arith.mulf %18, %17 : vector<8x512xf32>
    %20 = arith.addf %15, %19 : vector<8x512xf32>
    %c0_18 = arith.constant 0 : index
    %c2 = arith.constant 2 : index
    %21 = vector.load %arg5[%c0_18, %c2] : memref<8x33xf32, #tpu.memory_space<vmem>>, vector<8x1xf32>
    %c0_19 = arith.constant 0 : index
    %c114 = arith.constant 114 : index
    %22 = vector.load %arg10[%c0_19, %c114] : memref<8x656xf32, #tpu.memory_space<vmem>>, vector<8x512xf32>
    %23 = vector.broadcast %21 : vector<8x1xf32> to vector<8x512xf32>
    %24 = arith.mulf %23, %22 : vector<8x512xf32>
    %25 = arith.addf %20, %24 : vector<8x512xf32>
    %c0_20 = arith.constant 0 : index
    %c3 = arith.constant 3 : index
    %26 = vector.load %arg5[%c0_20, %c3] : memref<8x33xf32, #tpu.memory_space<vmem>>, vector<8x1xf32>
    %c0_21 = arith.constant 0 : index
    %c115 = arith.constant 115 : index
    %27 = vector.load %arg10[%c0_21, %c115] : memref<8x656xf32, #tpu.memory_space<vmem>>, vector<8x512xf32>
    %28 = vector.broadcast %26 : vector<8x1xf32> to vector<8x512xf32>
    %29 = arith.mulf %28, %27 : vector<8x512xf32>
    %30 = arith.addf %25, %29 : vector<8x512xf32>
    %c0_22 = arith.constant 0 : index
    %c4 = arith.constant 4 : index
    %31 = vector.load %arg5[%c0_22, %c4] : memref<8x33xf32, #tpu.memory_space<vmem>>, vector<8x1xf32>
    %c0_23 = arith.constant 0 : index
    %c116 = arith.constant 116 : index
    %32 = vector.load %arg10[%c0_23, %c116] : memref<8x656xf32, #tpu.memory_space<vmem>>, vector<8x512xf32>
    %33 = vector.broadcast %31 : vector<8x1xf32> to vector<8x512xf32>
    %34 = arith.mulf %33, %32 : vector<8x512xf32>
    %35 = arith.addf %30, %34 : vector<8x512xf32>
    %c0_24 = arith.constant 0 : index
    %c5 = arith.constant 5 : index
    %36 = vector.load %arg5[%c0_24, %c5] : memref<8x33xf32, #tpu.memory_space<vmem>>, vector<8x1xf32>
    %c0_25 = arith.constant 0 : index
    %c117 = arith.constant 117 : index
    %37 = vector.load %arg10[%c0_25, %c117] : memref<8x656xf32, #tpu.memory_space<vmem>>, vector<8x512xf32>
    %38 = vector.broadcast %36 : vector<8x1xf32> to vector<8x512xf32>
    %39 = arith.mulf %38, %37 : vector<8x512xf32>
    %40 = arith.addf %35, %39 : vector<8x512xf32>
    %c0_26 = arith.constant 0 : index
    %c6 = arith.constant 6 : index
    %41 = vector.load %arg5[%c0_26, %c6] : memref<8x33xf32, #tpu.memory_space<vmem>>, vector<8x1xf32>
    %c0_27 = arith.constant 0 : index
    %c118 = arith.constant 118 : index
    %42 = vector.load %arg10[%c0_27, %c118] : memref<8x656xf32, #tpu.memory_space<vmem>>, vector<8x512xf32>
    %43 = vector.broadcast %41 : vector<8x1xf32> to vector<8x512xf32>
    %44 = arith.mulf %43, %42 : vector<8x512xf32>
    %45 = arith.addf %40, %44 : vector<8x512xf32>
    %c0_28 = arith.constant 0 : index
    %c7 = arith.constant 7 : index
    %46 = vector.load %arg5[%c0_28, %c7] : memref<8x33xf32, #tpu.memory_space<vmem>>, vector<8x1xf32>
    %c0_29 = arith.constant 0 : index
    %c119 = arith.constant 119 : index
    %47 = vector.load %arg10[%c0_29, %c119] : memref<8x656xf32, #tpu.memory_space<vmem>>, vector<8x512xf32>
    %48 = vector.broadcast %46 : vector<8x1xf32> to vector<8x512xf32>
    %49 = arith.mulf %48, %47 : vector<8x512xf32>
    %50 = arith.addf %45, %49 : vector<8x512xf32>
    %c0_30 = arith.constant 0 : index
    %c8 = arith.constant 8 : index
    %51 = vector.load %arg5[%c0_30, %c8] : memref<8x33xf32, #tpu.memory_space<vmem>>, vector<8x1xf32>
    %c0_31 = arith.constant 0 : index
    %c120 = arith.constant 120 : index
    %52 = vector.load %arg10[%c0_31, %c120] : memref<8x656xf32, #tpu.memory_space<vmem>>, vector<8x512xf32>
    %53 = vector.broadcast %51 : vector<8x1xf32> to vector<8x512xf32>
    %54 = arith.mulf %53, %52 : vector<8x512xf32>
    %55 = arith.addf %50, %54 : vector<8x512xf32>
    %c0_32 = arith.constant 0 : index
    %c9 = arith.constant 9 : index
    %56 = vector.load %arg5[%c0_32, %c9] : memref<8x33xf32, #tpu.memory_space<vmem>>, vector<8x1xf32>
    %c0_33 = arith.constant 0 : index
    %c121 = arith.constant 121 : index
    %57 = vector.load %arg10[%c0_33, %c121] : memref<8x656xf32, #tpu.memory_space<vmem>>, vector<8x512xf32>
    %58 = vector.broadcast %56 : vector<8x1xf32> to vector<8x512xf32>
    %59 = arith.mulf %58, %57 : vector<8x512xf32>
    %60 = arith.addf %55, %59 : vector<8x512xf32>
    %c0_34 = arith.constant 0 : index
    %c10 = arith.constant 10 : index
    %61 = vector.load %arg5[%c0_34, %c10] : memref<8x33xf32, #tpu.memory_space<vmem>>, vector<8x1xf32>
    %c0_35 = arith.constant 0 : index
    %c122 = arith.constant 122 : index
    %62 = vector.load %arg10[%c0_35, %c122] : memref<8x656xf32, #tpu.memory_space<vmem>>, vector<8x512xf32>
    %63 = vector.broadcast %61 : vector<8x1xf32> to vector<8x512xf32>
    %64 = arith.mulf %63, %62 : vector<8x512xf32>
    %65 = arith.addf %60, %64 : vector<8x512xf32>
    %c0_36 = arith.constant 0 : index
    %c11 = arith.constant 11 : index
    %66 = vector.load %arg5[%c0_36, %c11] : memref<8x33xf32, #tpu.memory_space<vmem>>, vector<8x1xf32>
    %c0_37 = arith.constant 0 : index
    %c123 = arith.constant 123 : index
    %67 = vector.load %arg10[%c0_37, %c123] : memref<8x656xf32, #tpu.memory_space<vmem>>, vector<8x512xf32>
    %68 = vector.broadcast %66 : vector<8x1xf32> to vector<8x512xf32>
    %69 = arith.mulf %68, %67 : vector<8x512xf32>
    %70 = arith.addf %65, %69 : vector<8x512xf32>
    %c0_38 = arith.constant 0 : index
    %c12 = arith.constant 12 : index
    %71 = vector.load %arg5[%c0_38, %c12] : memref<8x33xf32, #tpu.memory_space<vmem>>, vector<8x1xf32>
    %c0_39 = arith.constant 0 : index
    %c124 = arith.constant 124 : index
    %72 = vector.load %arg10[%c0_39, %c124] : memref<8x656xf32, #tpu.memory_space<vmem>>, vector<8x512xf32>
    %73 = vector.broadcast %71 : vector<8x1xf32> to vector<8x512xf32>
    %74 = arith.mulf %73, %72 : vector<8x512xf32>
    %75 = arith.addf %70, %74 : vector<8x512xf32>
    %c0_40 = arith.constant 0 : index
    %c13 = arith.constant 13 : index
    %76 = vector.load %arg5[%c0_40, %c13] : memref<8x33xf32, #tpu.memory_space<vmem>>, vector<8x1xf32>
    %c0_41 = arith.constant 0 : index
    %c125 = arith.constant 125 : index
    %77 = vector.load %arg10[%c0_41, %c125] : memref<8x656xf32, #tpu.memory_space<vmem>>, vector<8x512xf32>
    %78 = vector.broadcast %76 : vector<8x1xf32> to vector<8x512xf32>
    %79 = arith.mulf %78, %77 : vector<8x512xf32>
    %80 = arith.addf %75, %79 : vector<8x512xf32>
    %c0_42 = arith.constant 0 : index
    %c14 = arith.constant 14 : index
    %81 = vector.load %arg5[%c0_42, %c14] : memref<8x33xf32, #tpu.memory_space<vmem>>, vector<8x1xf32>
    %c0_43 = arith.constant 0 : index
    %c126 = arith.constant 126 : index
    %82 = vector.load %arg10[%c0_43, %c126] : memref<8x656xf32, #tpu.memory_space<vmem>>, vector<8x512xf32>
    %83 = vector.broadcast %81 : vector<8x1xf32> to vector<8x512xf32>
    %84 = arith.mulf %83, %82 : vector<8x512xf32>
    %85 = arith.addf %80, %84 : vector<8x512xf32>
    %c0_44 = arith.constant 0 : index
    %c15 = arith.constant 15 : index
    %86 = vector.load %arg5[%c0_44, %c15] : memref<8x33xf32, #tpu.memory_space<vmem>>, vector<8x1xf32>
    %c0_45 = arith.constant 0 : index
    %c127 = arith.constant 127 : index
    %87 = vector.load %arg10[%c0_45, %c127] : memref<8x656xf32, #tpu.memory_space<vmem>>, vector<8x512xf32>
    %88 = vector.broadcast %86 : vector<8x1xf32> to vector<8x512xf32>
    %89 = arith.mulf %88, %87 : vector<8x512xf32>
    %90 = arith.addf %85, %89 : vector<8x512xf32>
    %c0_46 = arith.constant 0 : index
    %c16 = arith.constant 16 : index
    %91 = vector.load %arg5[%c0_46, %c16] : memref<8x33xf32, #tpu.memory_space<vmem>>, vector<8x1xf32>
    %c0_47 = arith.constant 0 : index
    %c128_48 = arith.constant 128 : index
    %92 = vector.load %arg10[%c0_47, %c128_48] : memref<8x656xf32, #tpu.memory_space<vmem>>, vector<8x512xf32>
    %93 = vector.broadcast %91 : vector<8x1xf32> to vector<8x512xf32>
    %94 = arith.mulf %93, %92 : vector<8x512xf32>
    %95 = arith.addf %90, %94 : vector<8x512xf32>
    %c0_49 = arith.constant 0 : index
    %c17 = arith.constant 17 : index
    %96 = vector.load %arg5[%c0_49, %c17] : memref<8x33xf32, #tpu.memory_space<vmem>>, vector<8x1xf32>
    %c0_50 = arith.constant 0 : index
    %c129 = arith.constant 129 : index
    %97 = vector.load %arg10[%c0_50, %c129] : memref<8x656xf32, #tpu.memory_space<vmem>>, vector<8x512xf32>
    %98 = vector.broadcast %96 : vector<8x1xf32> to vector<8x512xf32>
    %99 = arith.mulf %98, %97 : vector<8x512xf32>
    %100 = arith.addf %95, %99 : vector<8x512xf32>
    %c0_51 = arith.constant 0 : index
    %c18 = arith.constant 18 : index
    %101 = vector.load %arg5[%c0_51, %c18] : memref<8x33xf32, #tpu.memory_space<vmem>>, vector<8x1xf32>
    %c0_52 = arith.constant 0 : index
    %c130 = arith.constant 130 : index
    %102 = vector.load %arg10[%c0_52, %c130] : memref<8x656xf32, #tpu.memory_space<vmem>>, vector<8x512xf32>
    %103 = vector.broadcast %101 : vector<8x1xf32> to vector<8x512xf32>
    %104 = arith.mulf %103, %102 : vector<8x512xf32>
    %105 = arith.addf %100, %104 : vector<8x512xf32>
    %c0_53 = arith.constant 0 : index
    %c19 = arith.constant 19 : index
    %106 = vector.load %arg5[%c0_53, %c19] : memref<8x33xf32, #tpu.memory_space<vmem>>, vector<8x1xf32>
    %c0_54 = arith.constant 0 : index
    %c131 = arith.constant 131 : index
    %107 = vector.load %arg10[%c0_54, %c131] : memref<8x656xf32, #tpu.memory_space<vmem>>, vector<8x512xf32>
    %108 = vector.broadcast %106 : vector<8x1xf32> to vector<8x512xf32>
    %109 = arith.mulf %108, %107 : vector<8x512xf32>
    %110 = arith.addf %105, %109 : vector<8x512xf32>
    %c0_55 = arith.constant 0 : index
    %c20 = arith.constant 20 : index
    %111 = vector.load %arg5[%c0_55, %c20] : memref<8x33xf32, #tpu.memory_space<vmem>>, vector<8x1xf32>
    %c0_56 = arith.constant 0 : index
    %c132 = arith.constant 132 : index
    %112 = vector.load %arg10[%c0_56, %c132] : memref<8x656xf32, #tpu.memory_space<vmem>>, vector<8x512xf32>
    %113 = vector.broadcast %111 : vector<8x1xf32> to vector<8x512xf32>
    %114 = arith.mulf %113, %112 : vector<8x512xf32>
    %115 = arith.addf %110, %114 : vector<8x512xf32>
    %c0_57 = arith.constant 0 : index
    %c21 = arith.constant 21 : index
    %116 = vector.load %arg5[%c0_57, %c21] : memref<8x33xf32, #tpu.memory_space<vmem>>, vector<8x1xf32>
    %c0_58 = arith.constant 0 : index
    %c133 = arith.constant 133 : index
    %117 = vector.load %arg10[%c0_58, %c133] : memref<8x656xf32, #tpu.memory_space<vmem>>, vector<8x512xf32>
    %118 = vector.broadcast %116 : vector<8x1xf32> to vector<8x512xf32>
    %119 = arith.mulf %118, %117 : vector<8x512xf32>
    %120 = arith.addf %115, %119 : vector<8x512xf32>
    %c0_59 = arith.constant 0 : index
    %c22 = arith.constant 22 : index
    %121 = vector.load %arg5[%c0_59, %c22] : memref<8x33xf32, #tpu.memory_space<vmem>>, vector<8x1xf32>
    %c0_60 = arith.constant 0 : index
    %c134 = arith.constant 134 : index
    %122 = vector.load %arg10[%c0_60, %c134] : memref<8x656xf32, #tpu.memory_space<vmem>>, vector<8x512xf32>
    %123 = vector.broadcast %121 : vector<8x1xf32> to vector<8x512xf32>
    %124 = arith.mulf %123, %122 : vector<8x512xf32>
    %125 = arith.addf %120, %124 : vector<8x512xf32>
    %c0_61 = arith.constant 0 : index
    %c23 = arith.constant 23 : index
    %126 = vector.load %arg5[%c0_61, %c23] : memref<8x33xf32, #tpu.memory_space<vmem>>, vector<8x1xf32>
    %c0_62 = arith.constant 0 : index
    %c135 = arith.constant 135 : index
    %127 = vector.load %arg10[%c0_62, %c135] : memref<8x656xf32, #tpu.memory_space<vmem>>, vector<8x512xf32>
    %128 = vector.broadcast %126 : vector<8x1xf32> to vector<8x512xf32>
    %129 = arith.mulf %128, %127 : vector<8x512xf32>
    %130 = arith.addf %125, %129 : vector<8x512xf32>
    %c0_63 = arith.constant 0 : index
    %c24 = arith.constant 24 : index
    %131 = vector.load %arg5[%c0_63, %c24] : memref<8x33xf32, #tpu.memory_space<vmem>>, vector<8x1xf32>
    %c0_64 = arith.constant 0 : index
    %c136 = arith.constant 136 : index
    %132 = vector.load %arg10[%c0_64, %c136] : memref<8x656xf32, #tpu.memory_space<vmem>>, vector<8x512xf32>
    %133 = vector.broadcast %131 : vector<8x1xf32> to vector<8x512xf32>
    %134 = arith.mulf %133, %132 : vector<8x512xf32>
    %135 = arith.addf %130, %134 : vector<8x512xf32>
    %c0_65 = arith.constant 0 : index
    %c25 = arith.constant 25 : index
    %136 = vector.load %arg5[%c0_65, %c25] : memref<8x33xf32, #tpu.memory_space<vmem>>, vector<8x1xf32>
    %c0_66 = arith.constant 0 : index
    %c137 = arith.constant 137 : index
    %137 = vector.load %arg10[%c0_66, %c137] : memref<8x656xf32, #tpu.memory_space<vmem>>, vector<8x512xf32>
    %138 = vector.broadcast %136 : vector<8x1xf32> to vector<8x512xf32>
    %139 = arith.mulf %138, %137 : vector<8x512xf32>
    %140 = arith.addf %135, %139 : vector<8x512xf32>
    %c0_67 = arith.constant 0 : index
    %c26 = arith.constant 26 : index
    %141 = vector.load %arg5[%c0_67, %c26] : memref<8x33xf32, #tpu.memory_space<vmem>>, vector<8x1xf32>
    %c0_68 = arith.constant 0 : index
    %c138 = arith.constant 138 : index
    %142 = vector.load %arg10[%c0_68, %c138] : memref<8x656xf32, #tpu.memory_space<vmem>>, vector<8x512xf32>
    %143 = vector.broadcast %141 : vector<8x1xf32> to vector<8x512xf32>
    %144 = arith.mulf %143, %142 : vector<8x512xf32>
    %145 = arith.addf %140, %144 : vector<8x512xf32>
    %c0_69 = arith.constant 0 : index
    %c27 = arith.constant 27 : index
    %146 = vector.load %arg5[%c0_69, %c27] : memref<8x33xf32, #tpu.memory_space<vmem>>, vector<8x1xf32>
    %c0_70 = arith.constant 0 : index
    %c139 = arith.constant 139 : index
    %147 = vector.load %arg10[%c0_70, %c139] : memref<8x656xf32, #tpu.memory_space<vmem>>, vector<8x512xf32>
    %148 = vector.broadcast %146 : vector<8x1xf32> to vector<8x512xf32>
    %149 = arith.mulf %148, %147 : vector<8x512xf32>
    %150 = arith.addf %145, %149 : vector<8x512xf32>
    %c0_71 = arith.constant 0 : index
    %c28 = arith.constant 28 : index
    %151 = vector.load %arg5[%c0_71, %c28] : memref<8x33xf32, #tpu.memory_space<vmem>>, vector<8x1xf32>
    %c0_72 = arith.constant 0 : index
    %c140 = arith.constant 140 : index
    %152 = vector.load %arg10[%c0_72, %c140] : memref<8x656xf32, #tpu.memory_space<vmem>>, vector<8x512xf32>
    %153 = vector.broadcast %151 : vector<8x1xf32> to vector<8x512xf32>
    %154 = arith.mulf %153, %152 : vector<8x512xf32>
    %155 = arith.addf %150, %154 : vector<8x512xf32>
    %c0_73 = arith.constant 0 : index
    %c29 = arith.constant 29 : index
    %156 = vector.load %arg5[%c0_73, %c29] : memref<8x33xf32, #tpu.memory_space<vmem>>, vector<8x1xf32>
    %c0_74 = arith.constant 0 : index
    %c141 = arith.constant 141 : index
    %157 = vector.load %arg10[%c0_74, %c141] : memref<8x656xf32, #tpu.memory_space<vmem>>, vector<8x512xf32>
    %158 = vector.broadcast %156 : vector<8x1xf32> to vector<8x512xf32>
    %159 = arith.mulf %158, %157 : vector<8x512xf32>
    %160 = arith.addf %155, %159 : vector<8x512xf32>
    %c0_75 = arith.constant 0 : index
    %c30 = arith.constant 30 : index
    %161 = vector.load %arg5[%c0_75, %c30] : memref<8x33xf32, #tpu.memory_space<vmem>>, vector<8x1xf32>
    %c0_76 = arith.constant 0 : index
    %c142 = arith.constant 142 : index
    %162 = vector.load %arg10[%c0_76, %c142] : memref<8x656xf32, #tpu.memory_space<vmem>>, vector<8x512xf32>
    %163 = vector.broadcast %161 : vector<8x1xf32> to vector<8x512xf32>
    %164 = arith.mulf %163, %162 : vector<8x512xf32>
    %165 = arith.addf %160, %164 : vector<8x512xf32>
    %c0_77 = arith.constant 0 : index
    %c31 = arith.constant 31 : index
    %166 = vector.load %arg5[%c0_77, %c31] : memref<8x33xf32, #tpu.memory_space<vmem>>, vector<8x1xf32>
    %c0_78 = arith.constant 0 : index
    %c143 = arith.constant 143 : index
    %167 = vector.load %arg10[%c0_78, %c143] : memref<8x656xf32, #tpu.memory_space<vmem>>, vector<8x512xf32>
    %168 = vector.broadcast %166 : vector<8x1xf32> to vector<8x512xf32>
    %169 = arith.mulf %168, %167 : vector<8x512xf32>
    %170 = arith.addf %165, %169 : vector<8x512xf32>
    %c0_79 = arith.constant 0 : index
    %c32 = arith.constant 32 : index
    %171 = vector.load %arg5[%c0_79, %c32] : memref<8x33xf32, #tpu.memory_space<vmem>>, vector<8x1xf32>
    %c0_80 = arith.constant 0 : index
    %c144 = arith.constant 144 : index
    %172 = vector.load %arg10[%c0_80, %c144] : memref<8x656xf32, #tpu.memory_space<vmem>>, vector<8x512xf32>
    %173 = vector.broadcast %171 : vector<8x1xf32> to vector<8x512xf32>
    %174 = arith.mulf %173, %172 : vector<8x512xf32>
    %175 = arith.addf %170, %174 : vector<8x512xf32>
    %c0_81 = arith.constant 0 : index
    %c0_82 = arith.constant 0 : index
    %176 = vector.load %arg6[%c0_81, %c0_82] : memref<8x1xf32, #tpu.memory_space<vmem>>, vector<8x1xf32>
    %177 = vector.broadcast %176 : vector<8x1xf32> to vector<8x512xf32>
    %178 = arith.addf %175, %177 : vector<8x512xf32>
    %cst_83 = arith.constant 0.000000e+00 : f32
    %179 = vector.broadcast %cst_83 : f32 to vector<8x512xf32>
    %180 = arith.cmpf oge, %178, %179 : vector<8x512xf32>
    %cst_84 = arith.constant 0.00999999977 : f32
    %181 = vector.broadcast %cst_84 : f32 to vector<8x512xf32>
    %182 = arith.mulf %181, %178 : vector<8x512xf32>
    %183 = arith.select %180, %178, %182 : vector<8x512xi1>, vector<8x512xf32>
    %c0_85 = arith.constant 0 : index
    %c0_86 = arith.constant 0 : index
    %184 = vector.load %arg7[%c0_85, %c0_86] : memref<8x8xf32, #tpu.memory_space<vmem>>, vector<8x1xf32>
    %185 = vector.extract_strided_slice %183 {offsets = [0, 0], sizes = [1, 512], strides = [1, 1]} : vector<8x512xf32> to vector<1x512xf32>
    %186 = vector.broadcast %184 : vector<8x1xf32> to vector<8x512xf32>
    %187 = vector.broadcast %185 : vector<1x512xf32> to vector<8x512xf32>
    %188 = arith.mulf %186, %187 : vector<8x512xf32>
    %189 = arith.addf %9, %188 : vector<8x512xf32>
    %c0_87 = arith.constant 0 : index
    %c1_88 = arith.constant 1 : index
    %190 = vector.load %arg7[%c0_87, %c1_88] : memref<8x8xf32, #tpu.memory_space<vmem>>, vector<8x1xf32>
    %191 = vector.extract_strided_slice %183 {offsets = [1, 0], sizes = [1, 512], strides = [1, 1]} : vector<8x512xf32> to vector<1x512xf32>
    %192 = vector.broadcast %190 : vector<8x1xf32> to vector<8x512xf32>
    %193 = vector.broadcast %191 : vector<1x512xf32> to vector<8x512xf32>
    %194 = arith.mulf %192, %193 : vector<8x512xf32>
    %195 = arith.addf %189, %194 : vector<8x512xf32>
    %c0_89 = arith.constant 0 : index
    %c2_90 = arith.constant 2 : index
    %196 = vector.load %arg7[%c0_89, %c2_90] : memref<8x8xf32, #tpu.memory_space<vmem>>, vector<8x1xf32>
    %197 = vector.extract_strided_slice %183 {offsets = [2, 0], sizes = [1, 512], strides = [1, 1]} : vector<8x512xf32> to vector<1x512xf32>
    %198 = vector.broadcast %196 : vector<8x1xf32> to vector<8x512xf32>
    %199 = vector.broadcast %197 : vector<1x512xf32> to vector<8x512xf32>
    %200 = arith.mulf %198, %199 : vector<8x512xf32>
    %201 = arith.addf %195, %200 : vector<8x512xf32>
    %c0_91 = arith.constant 0 : index
    %c3_92 = arith.constant 3 : index
    %202 = vector.load %arg7[%c0_91, %c3_92] : memref<8x8xf32, #tpu.memory_space<vmem>>, vector<8x1xf32>
    %203 = vector.extract_strided_slice %183 {offsets = [3, 0], sizes = [1, 512], strides = [1, 1]} : vector<8x512xf32> to vector<1x512xf32>
    %204 = vector.broadcast %202 : vector<8x1xf32> to vector<8x512xf32>
    %205 = vector.broadcast %203 : vector<1x512xf32> to vector<8x512xf32>
    %206 = arith.mulf %204, %205 : vector<8x512xf32>
    %207 = arith.addf %201, %206 : vector<8x512xf32>
    %c0_93 = arith.constant 0 : index
    %c4_94 = arith.constant 4 : index
    %208 = vector.load %arg7[%c0_93, %c4_94] : memref<8x8xf32, #tpu.memory_space<vmem>>, vector<8x1xf32>
    %209 = vector.extract_strided_slice %183 {offsets = [4, 0], sizes = [1, 512], strides = [1, 1]} : vector<8x512xf32> to vector<1x512xf32>
    %210 = vector.broadcast %208 : vector<8x1xf32> to vector<8x512xf32>
    %211 = vector.broadcast %209 : vector<1x512xf32> to vector<8x512xf32>
    %212 = arith.mulf %210, %211 : vector<8x512xf32>
    %213 = arith.addf %207, %212 : vector<8x512xf32>
    %c0_95 = arith.constant 0 : index
    %c5_96 = arith.constant 5 : index
    %214 = vector.load %arg7[%c0_95, %c5_96] : memref<8x8xf32, #tpu.memory_space<vmem>>, vector<8x1xf32>
    %215 = vector.extract_strided_slice %183 {offsets = [5, 0], sizes = [1, 512], strides = [1, 1]} : vector<8x512xf32> to vector<1x512xf32>
    %216 = vector.broadcast %214 : vector<8x1xf32> to vector<8x512xf32>
    %217 = vector.broadcast %215 : vector<1x512xf32> to vector<8x512xf32>
    %218 = arith.mulf %216, %217 : vector<8x512xf32>
    %219 = arith.addf %213, %218 : vector<8x512xf32>
    %c0_97 = arith.constant 0 : index
    %c6_98 = arith.constant 6 : index
    %220 = vector.load %arg7[%c0_97, %c6_98] : memref<8x8xf32, #tpu.memory_space<vmem>>, vector<8x1xf32>
    %221 = vector.extract_strided_slice %183 {offsets = [6, 0], sizes = [1, 512], strides = [1, 1]} : vector<8x512xf32> to vector<1x512xf32>
    %222 = vector.broadcast %220 : vector<8x1xf32> to vector<8x512xf32>
    %223 = vector.broadcast %221 : vector<1x512xf32> to vector<8x512xf32>
    %224 = arith.mulf %222, %223 : vector<8x512xf32>
    %225 = arith.addf %219, %224 : vector<8x512xf32>
    %c0_99 = arith.constant 0 : index
    %c7_100 = arith.constant 7 : index
    %226 = vector.load %arg7[%c0_99, %c7_100] : memref<8x8xf32, #tpu.memory_space<vmem>>, vector<8x1xf32>
    %227 = vector.extract_strided_slice %183 {offsets = [7, 0], sizes = [1, 512], strides = [1, 1]} : vector<8x512xf32> to vector<1x512xf32>
    %228 = vector.broadcast %226 : vector<8x1xf32> to vector<8x512xf32>
    %229 = vector.broadcast %227 : vector<1x512xf32> to vector<8x512xf32>
    %230 = arith.mulf %228, %229 : vector<8x512xf32>
    %231 = arith.addf %225, %230 : vector<8x512xf32>
    %c0_101 = arith.constant 0 : index
    %c0_102 = arith.constant 0 : index
    %232 = vector.load %arg8[%c0_101, %c0_102] : memref<8x1xf32, #tpu.memory_space<vmem>>, vector<8x1xf32>
    %233 = vector.broadcast %232 : vector<8x1xf32> to vector<8x512xf32>
    %234 = arith.addf %231, %233 : vector<8x512xf32>
    %c0_103 = arith.constant 0 : index
    %c0_104 = arith.constant 0 : index
    %c0_105 = arith.constant 0 : index
    %235 = vector.load %arg2[%c0_103, %c0_104, %c0_105] : memref<1x8x512xf32, #tpu.memory_space<vmem>>, vector<1x8x512xf32>
    %236 = vector.shape_cast %235 : vector<1x8x512xf32> to vector<8x512xf32>
    %237 = arith.addf %234, %236 : vector<8x512xf32>
    %c0_106 = arith.constant 0 : index
    %c0_107 = arith.constant 0 : index
    %c0_108 = arith.constant 0 : index
    %238 = vector.load %arg9[%c0_106, %c0_107, %c0_108] : memref<1x8x512xf32, #tpu.memory_space<vmem>>, vector<1x8x512xf32>
    %239 = vector.shape_cast %238 : vector<1x8x512xf32> to vector<8x512xf32>
    %240 = vector.shape_cast %237 : vector<8x512xf32> to vector<1x8x512xf32>
    tpu.vector_store %arg9[%c0_106, %c0_107, %c0_108], %240 {strides = array<i32>} : memref<1x8x512xf32, #tpu.memory_space<vmem>>, vector<1x8x512xf32>,
    return
  }
  func.func @transform_0(%arg0: i32, %arg1: i32) -> (i32, i32, i32) {
    %c0_i32 = arith.constant 0 : i32
    %c0_i32_0 = arith.constant 0 : i32
    return %arg0, %c0_i32, %arg1 : i32, i32, i32
  }
  func.func @transform_1(%arg0: i32, %arg1: i32) -> (i32, i32, i32) {
    %c3_i32 = arith.constant 3 : i32
    %0 = arith.muli %arg0, %c3_i32 : i32
    %1 = arith.addi %0, %arg1 : i32
    %c0_i32 = arith.constant 0 : i32
    %c0_i32_0 = arith.constant 0 : i32
    %c0_i32_1 = arith.constant 0 : i32
    return %1, %c0_i32, %c0_i32_0 : i32, i32, i32
  }
  func.func @transform_2(%arg0: i32, %arg1: i32) -> (i32, i32, i32) {
    %c3_i32 = arith.constant 3 : i32
    %0 = arith.muli %arg0, %c3_i32 : i32
    %1 = arith.addi %0, %arg1 : i32
    %c0_i32 = arith.constant 0 : i32
    %c0_i32_0 = arith.constant 0 : i32
    %c0_i32_1 = arith.constant 0 : i32
    return %1, %c0_i32, %c0_i32_0 : i32, i32, i32
  }
  func.func @transform_3(%arg0: i32, %arg1: i32) -> (i32, i32) {
    %c0_i32 = arith.constant 0 : i32
    %c0_i32_0 = arith.constant 0 : i32
    %c0_i32_1 = arith.constant 0 : i32
    return %c0_i32, %c0_i32_0 : i32, i32
  }
  func.func @transform_4(%arg0: i32, %arg1: i32) -> (i32, i32) {
    %c0_i32 = arith.constant 0 : i32
    %c0_i32_0 = arith.constant 0 : i32
    %c0_i32_1 = arith.constant 0 : i32
    return %c0_i32, %c0_i32_0 : i32, i32
  }
  func.func @transform_5(%arg0: i32, %arg1: i32) -> (i32, i32) {
    %c0_i32 = arith.constant 0 : i32
    %c0_i32_0 = arith.constant 0 : i32
    %c0_i32_1 = arith.constant 0 : i32
    return %c0_i32, %c0_i32_0 : i32, i32
  }
  func.func @transform_6(%arg0: i32, %arg1: i32) -> (i32, i32) {
    %c0_i32 = arith.constant 0 : i32
    %c0_i32_0 = arith.constant 0 : i32
    %c0_i32_1 = arith.constant 0 : i32
    return %c0_i32, %c0_i32_0 : i32, i32
  }
  func.func @transform_7(%arg0: i32, %arg1: i32) -> (i32, i32, i32) {
    %c0_i32 = arith.constant 0 : i32
    %c0_i32_0 = arith.constant 0 : i32
    return %arg0, %c0_i32, %arg1 : i32, i32, i32
  }
}

</mosaic_0001>

<bundles_post_ra>
// kernel: tpu_custom_call.1
= control target key start
LH: loop header
LB: loop body
LE: loop exit
PB: predicated region body
PF: predicated region fallthrough
CT: control target
= control target key end

     0   :  { %s4061_s0 = inlined_call_operand.hbm [shape: f32[2,8,1536], index: 0, kind: input, shape index: {}]   ;;  %s4062_s1 = inlined_call_operand.hbm [shape: f32[6,8,16], index: 1, kind: input, shape index: {}]   ;;  %s4063_s2 = inlined_call_operand.hbm [shape: f32[6,8,16], index: 2, kind: input, shape index: {}]   ;;  %s4064_s3 = inlined_call_operand.vmem [shape: f32[8,33], index: 3, kind: input, shape index: {}]   ;;  %s4065_s4 = inlined_call_operand.vmem [shape: f32[8,1], index: 4, kind: input, shape index: {}]   ;;  %s4066_s5 = inlined_call_operand.vmem [shape: f32[8,8], index: 5, kind: input, shape index: {}]   ;;  %s4067_s6 = inlined_call_operand.vmem [shape: f32[8,1], index: 6, kind: input, shape index: {}]   ;;  %s4068_s7 = inlined_call_operand.hbm [shape: f32[2,8,1536], index: 7, kind: output, shape index: {}]  }
   0x1   :  { %4135 = sst [smem:[#allocation76_spill]] %s4062_s1 }
   0x2   :  { %4136 = sst [smem:[#allocation77_spill]] %s4066_s5 }
   0x3   :  { %4137 = sst [smem:[#allocation78_spill]] %s4067_s6 }
   0x4   :  { %4138 = sst [smem:[#allocation79_spill]] %s4068_s7 }
   0x5   :  { %12 = vsyncpa [#allocation4], 0 }
   0x6   :  { %14 = vsyncpa [#allocation4 + $0x1], 0 }
   0x7   :  { %15 = vsyncpa [#allocation7], 0 }
   0x8   :  { %17 = vsyncpa [#allocation7 + $0x1], 0 }
   0x9   :  { %18 = vsyncpa [#allocation5], 0 }
   0xa   :  { %20 = vsyncpa [#allocation5 + $0x1], 0  ;;  %s2783_s24 = smov 0   ;;  %s2785_s25 = smov 0  }
   0xb   :  { %s2787_s26 = smov 0   ;;  %s2789_s27 = smov 0  }
   0xc   :  { %s2791_s28 = smov 0   ;;  %s2793_s29 = smov 0  }
   0xd   :  { %s2795_s30 = smov 0   ;;  %s2797_s8 = smov 0  }
   0xe   :  { %s2799_s9 = smov 0   ;;  %s2801_s10 = smov 0  }
   0xf   :  { %s2803_s11 = smov 0  }
  0x10 LB: > { %4139 = sst [smem:[#allocation13_spill]] %s2639_s26  ;;  %s2839_s12 = sadd.s32 4294967295, %s2671_s11   ;;  %s2671_s11 = sphi %s2803_s11, %s26_s11   ;;  %s2667_s10 = sphi %s2801_s10, %s4301_s10   ;;  %s2663_s9 = sphi %s2799_s9, %s4295_s9   ;;  %s2659_s8 = sphi %s2797_s8, %s4294_s8   ;;  %s2655_s30 = sphi %s2795_s30, %s4293_s30   ;;  %s2651_s29 = sphi %s2793_s29, %s4292_s29   ;;  %s2647_s28 = sphi %s2791_s28, %s4300_s28   ;;  %s2643_s27 = sphi %s2789_s27, %s4299_s27   ;;  %s2639_s26 = sphi %s2787_s26, %s4290_s26   ;;  %s2635_s25 = sphi %s2785_s25, %s4298_s25   ;;  %s2631_s24 = sphi %s2783_s24, %s4297_s24  }
  0x11   : > { %4140 = sst [smem:[#allocation14_spill]] %s2643_s27  ;;  %s35_s13 = sadd.s32 1, %s2663_s9 }
  0x12   : > { %4141 = sst [smem:[#allocation15_spill]] %s2651_s29  ;;  %p36_p0 = scmp.ge.s32.totalorder %s35_s13, 3 }
  0x13   : > { %4142 = sst [smem:[#allocation16_spill]] %s2655_s30  ;;  %s38_s14 = sadd.s32 1, %s2667_s10 }
  0x14   : > { %4143 = sst [smem:[#allocation17_spill]] %s2659_s8  ;;  %p4074_p1 = scmp.eq.s32.totalorder %s2671_s11, 0 }
  0x15   : > { %4144 = sst [smem:[#allocation18_spill]] %s2663_s9  ;;  %p4073_p2 = scmp.eq.s32.totalorder %s2839_s12, 0 }
  0x16   : > { %4145 = sst [smem:[#allocation19_spill]] %s2667_s10  ;;  %s4303_s13 = smov (%p36_p0, %s35_s13), 0 }
  0x17   : > { %4146 = sst [smem:[#allocation20_spill]] %s4303_s13  ;;  %s4305_s14 = smov (!%p36_p0, %s38_s14), %s2667_s10 }
  0x18   : > { %s43_s15 = ssub.s32 %s2663_s9, %s4303_s13  ;;  %s70_s16 = smul.u32 3, %s2667_s10 }
  0x19   : > { %p40_p3 = scmp.ge.s32.totalorder %s4305_s14, 2  ;;  %s77_s17 = sadd.s32 1, %s2639_s26 }
  0x1a   : > { %s71_s18 = sadd.s32 %s2663_s9, %s70_s16  ;;  %p84_p4 = scmp.ne.s32.totalorder %s2639_s26, %s2635_s25 }
  0x1b   : > { %s4307_s14 = smov (%p40_p3, %s4305_s14), 0  ;;  %p90_p6 = scmp.ne.s32.totalorder %s2635_s25, %s2631_s24 }
  0x1c   : > { %4147 = sst [smem:[#allocation21_spill]] %s4307_s14  ;;  %p2859_p5 = por %p84_p4, %p4074_p1 }
  0x1d   : > { %s42_s20 = ssub.s32 %s2667_s10, %s4307_s14  ;;  %s72_s21 = smul.u32 3, %s4307_s14 }
  0x1e   : > { %s2868_s22 = sor.u32 %s43_s15, %s42_s20  ;;  %p2872_p7 = por %p90_p6, %p4073_p2 }
  0x1f   : > { %s73_s16 = sadd.s32 %s72_s21, %s4303_s13  ;;  %p4072_p10 = scmp.lt.s32.totalorder %s2671_s11, 6 }
  0x20   : > { %s4149_s23 = scalar_select %p2872_p7, 1, 0 }
  0x21   : > { %s74_s7 = ssub.s32 %s71_s18, %s73_s16  ;;  %s289_s30 = sand.u32 1, %s2671_s11  }
  0x22   : > { %p75_p9 = scmp.eq.s32.totalorder %s74_s7, 0  ;;  %s291_s24 = sand.u32 1, %s2639_s26  }
  0x23   : > { %s2884_s15 = sshll.u32 %s291_s24, 3  ;;  %s2215_s20 = sshll.u32 %s71_s18, 7 }
  0x24   : > { %s2882_s8 = scalar_select %p75_p9, %s2639_s26, %s77_s17  }
  0x25   : > { %s4151_s1 = sld [smem:[#allocation76_spill]]  ;;  %s293_s21 = scalar_lea.vmem [#allocation6], %s2884_s15 }
  0x26   : > { %4150 = sst [smem:[#allocation22_spill]] %s2882_s8  ;;  %s302_s7 = sshll.u32 %s293_s21, 4  ;;  %s2892_s7 = int_to_ptr.vmem [resolvable:$true] %s302_s7 }
  0x27   : > { %p2898_p11 = pnand %p4072_p10, %p2859_p5  ;;  %s2905_s6 = scalar_lea.hbm %s4063_s2, %s2215_s20 }
  0x28   : > { %s2908_s14 = scalar_lea.sflag [#allocation7], %s289_s30 }
  0x29   : > { %p4075_p0 = pneg %p2898_p11 }
  0x2b   : > { %s2889_s5 = scalar_lea.hbm %s4151_s1, %s2215_s20  ;;  %s2460_s13 = scalar_lea.hbm %s4151_s1, 768 }
  0x2c   : > { %s2455_s24 = scalar_lea.hbm %s2889_s5, 128  ;;  %p2461_p5 = scmp.lt.u32.totalorder %s2889_s5, %s4151_s1 }
  0x2d   : > { %p2456_p13 = scmp.ne.s32.totalorder %s2889_s5, %s2455_s24  ;;  %p2462_p6 = scmp.lt.u32.totalorder %s2460_s13, %s2455_s24 }
  0x2e   : > { %p2464_p10 = scmp.lt.u32.totalorder %s2455_s24, %s2889_s5 }
  0x2f   : > { %p2458_p3 = pnand %p4075_p0, %p2456_p13  ;;  %p2463_p9 = por %p2462_p6, %p2461_p5 }
  0x31   : > { %p2459_p4 = pneg %p2458_p3  ;;  %p2465_p2 = por %p2464_p10, %p2463_p9 }
  0x33   : > { %p2466_p1 = pnand %p2465_p2, %p2459_p4 }
  0x35   : > { %2469 = shalt.err (!%p2466_p1)
}
  0x36   : > { %s2470_s30 = scalar_lea.vmem %s2892_s7, 128  ;;  %s2673_s20 = smov [#allocation6]  }
  0x37   : > { %p2471_p13 = scmp.ne.s32.totalorder %s2892_s7, %s2470_s30  ;;  %s2475_s19 = sshll.u32 %s2673_s20, 4  ;;  %s2476_s19 = int_to_ptr.vmem [resolvable:$false] %s2475_s19 }
  0x38   : > { %s2477_s21 = scalar_lea.vmem %s2476_s19, 256  ;;  %p2478_p12 = scmp.lt.s32.totalorder %s2892_s7, %s2476_s19 }
  0x39   : > { %p2473_p3 = pnand %p2471_p13, %p4075_p0  ;;  %p2479_p5 = scmp.lt.s32.totalorder %s2477_s21, %s2470_s30 }
  0x3b   : > { %p2474_p8 = pneg %p2473_p3  ;;  %p2480_p6 = por %p2479_p5, %p2478_p12 }
  0x3d   : > { %p2481_p10 = pnand %p2480_p6, %p2474_p8 }
  0x3f   : > { %2484 = shalt.err (!%p2481_p10)
}
  0x40   : > { %2244 = dma.hbm_to_vmem [thread:$0]  (!%p2898_p11), %s2889_s5, 128, %s2892_s7, %s2908_s14  }
  0x41   : > { %p327_p1 = scmp.lt.s32.totalorder %s2671_s11, 7  ;;  %p4153_p2 = scmp.ge.s32.totalorder %s2671_s11, 1 }
  0x42   : > { %s2208_s24 = sadd.s32 4294967294, %s2671_s11   ;;  %s47_s18 = sadd.s32 1, %s2651_s29 }
  0x43   : > { %p2939_p8 = pnand %p4153_p2, %p327_p1  ;;  %p4155_p12 = scmp.eq.s32.totalorder %s2868_s22, 0 }
  0x44   : > { %p54_p4 = scmp.ne.s32.totalorder %s2651_s29, %s2647_s28  ;;  %p60_p9 = scmp.ne.s32.totalorder %s2647_s28, %s2643_s27 }
  0x45   : > { %s4154_s13 = scalar_select %p2939_p8, 1, 0 }
  0x46   : > { %s2948_s16 = scalar_select %p4155_p12, %s2651_s29, %s47_s18  }
  0x47   : > { %p230_p13 = scmp.eq.s32.totalorder %s2839_s12, 5  ;;  %p236_p3 = scmp.eq.s32.totalorder %s2208_s24, 5 }
  0x48   : > { %4156 = sst [smem:[#allocation23_spill]] %s2948_s16  ;;  %p4157_p5 = scmp.eq.s32.totalorder %s2671_s11, 0 }
  0x49   : > { %p4158_p10 = scmp.eq.s32.totalorder %s2839_s12, 0  ;;  %p2963_p1 = por %p230_p13, %p54_p4 }
  0x4a   : > { %p56_p6 = por %p4157_p5, %p54_p4  ;;  %p2967_p2 = por %p236_p3, %p60_p9 }
  0x4b   : > { %p2959_p0 = por %p4158_p10, %p60_p9  ;;  %s268_s30 = sand.u32 1, %s2651_s29  }
  0x4c   : > { %s4160_s7 = scalar_select %p2963_p1, 1, 0 }
  0x4d   : > { %s4159_s5 = scalar_select %p2959_p0, 1, 0 }
  0x4e   : > { %s4161_s22 = scalar_select %p2967_p2, 1, 0 }
  0x4f   : > { %s2212_s20 = sshll.u32 %s2663_s9, 2  ;;  %s2211_s19 = sshll.u32 %s268_s30, 5 }
  0x50   : > { %s2228_s21 = smul.u32 12, %s2667_s10  ;;  %s272_s24 = scalar_lea.vmem [#allocation3], %s2211_s19 }
  0x51   : > { %s282_s18 = sshll.u32 %s272_s24, 4  ;;  %p4162_p12 = scmp.lt.s32.totalorder %s2671_s11, 6  ;;  %s2980_s18 = int_to_ptr.vmem [resolvable:$true] %s282_s18 }
  0x52   : > { %s278_s16 = sadd.s32 %s2228_s21, %s2212_s20  ;;  %s313_s19 = scalar_lea.vmem [#allocation8], %s2884_s15 }
  0x53   : > { %p2976_p5 = pnand %p4162_p12, %p56_p6  ;;  %s2213_s8 = sshll.u32 %s278_s16, 7 }
  0x54   : > { %s2985_s29 = scalar_lea.hbm %s4061_s0, %s2213_s8  ;;  %s2988_s24 = sshll.u32 %s313_s19, 4  ;;  %s323_s24 = int_to_ptr.vmem [resolvable:$true] %s2988_s24 }
  0x55   : > { %s269_s10 = scalar_lea.sflag [#allocation4], %s268_s30  ;;  %s2485_s9 = scalar_lea.hbm %s2985_s29, 512 }
  0x56   : > { %p2486_p4 = scmp.ne.s32.totalorder %s2985_s29, %s2485_s9  ;;  %p2487_p9 = pneg %p2976_p5 }
  0x57   : > { %s2490_s27 = scalar_lea.hbm %s4061_s0, 3072  ;;  %p2491_p6 = scmp.lt.u32.totalorder %s2985_s29, %s4061_s0 }
  0x58   : > { %p2488_p13 = pnand %p2487_p9, %p2486_p4  ;;  %p2492_p10 = scmp.lt.u32.totalorder %s2490_s27, %s2485_s9 }
  0x59   : > { %p2494_p2 = scmp.lt.u32.totalorder %s2485_s9, %s2985_s29 }
  0x5a   : > { %p2489_p3 = pneg %p2488_p13  ;;  %p2493_p12 = por %p2492_p10, %p2491_p6 }
  0x5c   : > { %p2495_p1 = por %p2494_p2, %p2493_p12 }
  0x5e   : > { %p2496_p7 = pnand %p2495_p1, %p2489_p3 }
  0x60   : > { %2499 = shalt.err (!%p2496_p7)
}
  0x61   : > { %s2500_s15 = scalar_lea.vmem %s2980_s18, 512  ;;  %s2674_s30 = smov [#allocation3]  }
  0x62   : > { %p2501_p4 = scmp.ne.s32.totalorder %s2980_s18, %s2500_s15  ;;  %s2505_s21 = sshll.u32 %s2674_s30, 4  ;;  %s2506_s21 = int_to_ptr.vmem [resolvable:$false] %s2505_s21 }
  0x63   : > { %s2507_s19 = scalar_lea.vmem %s2506_s21, 1024  ;;  %p2508_p8 = scmp.lt.s32.totalorder %s2980_s18, %s2506_s21 }
  0x64   : > { %p2503_p13 = pnand %p2501_p4, %p2487_p9  ;;  %p2509_p6 = scmp.lt.s32.totalorder %s2507_s19, %s2500_s15 }
  0x66   : > { %p2504_p0 = pneg %p2503_p13  ;;  %p2510_p10 = por %p2509_p6, %p2508_p8 }
  0x68   : > { %p2511_p2 = pnand %p2510_p10, %p2504_p0 }
  0x6a   : > { %2514 = shalt.err (!%p2511_p2)
}
  0x6b   : > { %2241 = dma.hbm_to_vmem [thread:$0]  (!%p2976_p5), %s2985_s29, 512, %s2980_s18, %s269_s10  }
  0x6c   : > { %s2515_s9 = scalar_lea.hbm %s2905_s6, 128  ;;  %p4164_p1 = pneg %p2898_p11 }
  0x6d   : > { %p2516_p7 = scmp.ne.s32.totalorder %s2905_s6, %s2515_s9  ;;  %s2520_s1 = scalar_lea.hbm %s4063_s2, 768 }
  0x6e   : > { %p2521_p0 = scmp.lt.u32.totalorder %s2905_s6, %s4063_s2  ;;  %p2522_p3 = scmp.lt.u32.totalorder %s2520_s1, %s2515_s9 }
  0x6f   : > { %p2518_p9 = pnand %p2516_p7, %p4164_p1  ;;  %p2524_p4 = scmp.lt.u32.totalorder %s2515_s9, %s2905_s6 }
  0x70   : > { %p2523_p12 = por %p2522_p3, %p2521_p0 }
  0x71   : > { %p2519_p8 = pneg %p2518_p9 }
  0x72   : > { %p2525_p13 = por %p2524_p4, %p2523_p12 }
  0x74   : > { %p2526_p5 = pnand %p2525_p13, %p2519_p8 }
  0x76   : > { %2529 = shalt.err (!%p2526_p5)
}
  0x77   : > { %s2530_s29 = scalar_lea.vmem %s323_s24, 128  ;;  %p4165_p10 = pmov %p4164_p1 }
  0x78   : > { %p2531_p6 = scmp.ne.s32.totalorder %s323_s24, %s2530_s29  ;;  %s2675_s10 = smov [#allocation8]  }
  0x79   : > { %s2535_s18 = sshll.u32 %s2675_s10, 4  ;;  %s2536_s18 = int_to_ptr.vmem [resolvable:$false] %s2535_s18 }
  0x7a   : > { %p2533_p2 = pnand %p2531_p6, %p4165_p10  ;;  %s2537_s20 = scalar_lea.vmem %s2536_s18, 256 }
  0x7b   : > { %p2538_p1 = scmp.lt.s32.totalorder %s323_s24, %s2536_s18  ;;  %p2539_p9 = scmp.lt.s32.totalorder %s2537_s20, %s2530_s29 }
  0x7c   : > { %p2534_p7 = pneg %p2533_p2 }
  0x7d   : > { %p2540_p0 = por %p2539_p9, %p2538_p1 }
  0x7f   : > { %p2541_p3 = pnand %p2540_p0, %p2534_p7 }
  0x81   : > { %2544 = shalt.err (!%p2541_p3)
}
  0x82   : > { %2247 = dma.hbm_to_vmem [thread:$0]  (!%p2898_p11), %s2905_s6, 128, %s323_s24, %s2908_s14  }
  0x83   : > { %p4166_p8 = scmp.ne.s32.totalorder %s4154_s13, 0 }
  0x85   : > { %331 = sbr.rel (%p4166_p8) target bundleno = 1912 (0x778), region = 48 }
  0x8c   : > { %s3039_s15 = sand.u32 1, %s2647_s28   ;;  %p4167_p12 = scmp.ne.s32.totalorder %s4159_s5, 0 }
  0x8d   : > { %s2219_s30 = sshll.u32 %s3039_s15, 5  ;;  %s334_s21 = scalar_lea.sflag [#allocation4], %s3039_s15 }
  0x8e   : > { %s3045_s19 = scalar_lea.vmem [#allocation3], %s2219_s30 }
  0x8f   : > { %2618 = dma.done.wait (%p4167_p12), %s334_s21, 512  }
  0x90   : > { %2620 = vsyncadd (%p4167_p12), %s334_s21, 4294966784  ;;  %s342_s17 = sand.u32 1, %s2839_s12   ;;  %s344_s6 = sand.u32 1, %s2635_s25  }
  0x91   : > { %s3053_s14 = sshll.u32 %s344_s6, 3  ;;  %s343_s13 = scalar_lea.sflag [#allocation7], %s342_s17 }
  0x92   : > { %s346_s24 = scalar_lea.vmem [#allocation6], %s3053_s14  ;;  %p4168_p11 = scmp.ne.s32.totalorder %s4149_s23, 0 }
  0x94   : > { %2622 = dma.done.wait (%p4168_p11), %s343_s13, 256  }
  0x95   : > { %2624 = vsyncadd (%p4168_p11), %s343_s13, 4294967040  ;;  %v4090_v0 = vmov 1   ;;  %v3064_v1 = vld [vmem:[%s4064_s3] sm:$0xff]  ;;  %v402_v2 = vld [vmem:[%s346_s24] sm:$0xff]  ;;  %s2677_s9 = smov 112   ;;  %v4088_v7 = vmov 2  }
  0x96   : > { %2408 = vset.pattern.permute.xlu1 %v4090_v0  ;;  %v3067_v3 = vld [vmem:[%s3045_s19 + $0x8] sm:$0xff]  ;;  %404 = vrot.lane.b32.xlu0 %v402_v2, %s2677_s9  ;;  %v3073_v4 = vld [vmem:[%s3045_s19 + $0x18] sm:$0xff]  ;;  %v3076_v5 = vld [vmem:[%s3045_s19] sm:$0xff]  ;;  %v4089_v8 = vmov 3   ;;  %v4086_v9 = vmov 4   ;;  %v4085_v10 = vmov 5  }
  0x97   : > { %442 = vperm.xlu1 %2408, %v3064_v1   ;;  %414 = vst [vmem:[#allocation2 + $0x10] sm:$0xff] %v3067_v3  ;;  %v3079_v6 = vld [vmem:[%s3045_s19 + $0x10] sm:$0xff]  ;;  %416 = vst [vmem:[#allocation2 + $0x20] sm:$0xff] %v3073_v4  ;;  %v4087_v11 = vmov 6   ;;  %v4084_v12 = vmov 7   ;;  %v2684_v13 = vmov 8  }
  0x98   : > { %413 = vst [vmem:[#allocation2 + $0x8] sm:$0xff] %v3076_v5  ;;  %415 = vst [vmem:[#allocation2 + $0x18] sm:$0xff] %v3079_v6  ;;  %v2685_v14 = vmov 9   ;;  %v2686_v15 = vmov 10   ;;  %v2687_v16 = vmov 11   ;;  %v2688_v17 = vmov 12  }
  0x99   : > { %v2689_v18 = vmov 13   ;;  %vm407_vm0 = vcmask 1048448   ;;  %s2690_s23 = smov 127   ;;  %s2691_s16 = smov 126   ;;  %vm418_vm1 = vcmask 130048   ;;  %vm465_vm2 = vcmask 1039360  }
  0x9a   : > { %s2692_s26 = smov 125   ;;  %s2693_s1 = smov 124   ;;  %vm504_vm3 = vcmask 1031168   ;;  %vm543_vm4 = vcmask 1022976   ;;  %vm582_vm5 = vcmask 1014784   ;;  %vm621_vm6 = vcmask 1006592  }
  0x9b   : > { %2409 = vset.pattern.permute.xlu1 %v4088_v7  ;;  %s2694_s27 = smov 123   ;;  %s2695_s8 = smov 122   ;;  %vm660_vm7 = vcmask 998400   ;;  %vm699_vm8 = vcmask 990208   ;;  %vm738_vm9 = vcmask 982016   ;;  %vm777_vm10 = vcmask 973824  }
  0x9c   : > { %481 = vperm.xlu1 %2409, %v3064_v1   ;;  %s2696_s29 = smov 121   ;;  %s2697_s10 = smov 120   ;;  %vm816_vm11 = vcmask 965632   ;;  %vm855_vm12 = vcmask 957440   ;;  %vm894_vm13 = vcmask 949248   ;;  %vm933_vm14 = vcmask 941056  }
  0x9d   : > { %s2698_s18 = smov 119   ;;  %s2699_s20 = smov 118   ;;  %vm972_vm15 = vcmask 932864  }
  0x9e   : > { %s2700_s21 = smov 117   ;;  %s2701_s17 = smov 116  }
  0x9f   : > { %s2703_s6 = smov 115   ;;  %s2705_s13 = smov 114  }
  0xa0   : > { %2410 = vset.pattern.permute.xlu1 %v4089_v8  ;;  %s2707_s24 = smov 113   ;;  %s355_s5 = scalar_lea.vmem [#allocation8], %s3053_s14 }
  0xa1   : > { %520 = vperm.xlu1 %2410, %v3064_v1   ;;  %v417_v8 = vld [vmem:[%s355_s5] sm:$0xff]  ;;  %s2710_s14 = smov 111   ;;  %s2712_s12 = smov 110  }
  0xa2   : > { %419 = vst.msk [vmem:[#allocation2 + $0x28] sm:$0xff] %vm418_vm1, %v417_v8  ;;  %s2740_s5 = smov 96   ;;  %p4286_p13 = scmp.ne.s32.totalorder %s4160_s7, 0 }
  0xa5   : > { %2411 = vset.pattern.permute.xlu1 %v4086_v9 }
  0xa6   : > { %559 = vperm.xlu1 %2411, %v3064_v1  }
  0xaa   : > { %2412 = vset.pattern.permute.xlu1 %v4085_v10 }
  0xab   : > { %598 = vperm.xlu1 %2412, %v3064_v1  }
  0xaf   : > { %2413 = vset.pattern.permute.xlu1 %v4087_v11 }
  0xb0   : > { %637 = vperm.xlu1 %2413, %v3064_v1  }
  0xb4   : > { %2414 = vset.pattern.permute.xlu1 %v4084_v12 }
  0xb5   : > { %676 = vperm.xlu1 %2414, %v3064_v1  }
  0xb9   : > { %2415 = vset.pattern.permute.xlu1 %v2684_v13 }
  0xba   : > { %715 = vperm.xlu1 %2415, %v3064_v1  }
  0xbe   : > { %2416 = vset.pattern.permute.xlu1 %v2685_v14 }
  0xbf   : > { %754 = vperm.xlu1 %2416, %v3064_v1  }
  0xc3   : > { %2417 = vset.pattern.permute.xlu1 %v2686_v15 }
  0xc4   : > { %793 = vperm.xlu1 %2417, %v3064_v1  }
  0xc8   : > { %2418 = vset.pattern.permute.xlu1 %v2687_v16 }
  0xc9   : > { %832 = vperm.xlu1 %2418, %v3064_v1  }
  0xcd   : > { %2419 = vset.pattern.permute.xlu1 %v2688_v17 }
  0xce   : > { %871 = vperm.xlu1 %2419, %v3064_v1  }
  0xd2   : > { %2420 = vset.pattern.permute.xlu1 %v2689_v18 }
 0x108   : > { %v405_v19 = vpop.permute.xlu0 %404 }
 0x109   : > { %408 = vst.msk [vmem:[#allocation2] sm:$0xff] %vm407_vm0, %v405_v19  ;;  %vm1011_vm0 = vcmask 924672  }
 0x110   : > { %v3101_v20 = vld [vmem:[#allocation2] sm:$0xff] }
 0x116   : > { %v443_v21 = vpop.permute.xlu1 %442 }
 0x117   : > { %v447_v22 = vmul.f32 %v443_v21, %v3067_v3  ;;  %v445_v23 = vmul.f32 %v443_v21, %v3101_v20  ;;  %v449_v24 = vmul.f32 %v443_v21, %v3073_v4  ;;  %v446_v25 = vmul.f32 %v443_v21, %v3076_v5 }
 0x118   : > { %v448_v28 = vmul.f32 %v443_v21, %v3079_v6 }
 0x119   : > { %459 = vrot.lane.b32.xlu0 %v447_v22, %s2690_s23  ;;  %455 = vrot.lane.b32.xlu1 %v445_v23, %s2690_s23 }
 0x11b   : > { %v482_v26 = vpop.permute.xlu1 %481 }
 0x11c   : > { %v484_v27 = vmul.f32 %v482_v26, %v3101_v20  ;;  %v486_v29 = vmul.f32 %v482_v26, %v3067_v3  ;;  %v485_v30 = vmul.f32 %v482_v26, %v3076_v5  ;;  %v488_v31 = vmul.f32 %v482_v26, %v3073_v4 }
 0x11d   : > { %463 = vrot.lane.b32.xlu0 %v449_v24, %s2690_s23  ;;  %457 = vrot.lane.b32.xlu1 %v446_v25, %s2690_s23  ;;  %v487_v32 = vmul.f32 %v482_v26, %v3079_v6 }
 0x120   : > { %v521_v33 = vpop.permute.xlu1 %520 }
 0x121   : > { %494 = vrot.lane.b32.xlu0 %v484_v27, %s2691_s16  ;;  %461 = vrot.lane.b32.xlu1 %v448_v28, %s2690_s23  ;;  %v524_v34 = vmul.f32 %v521_v33, %v3076_v5  ;;  %v523_v35 = vmul.f32 %v521_v33, %v3101_v20  ;;  %v525_v36 = vmul.f32 %v521_v33, %v3067_v3  ;;  %s2715_s23 = smov 109  }
 0x122   : > { %v526_v37 = vmul.f32 %v521_v33, %v3079_v6  ;;  %v527_v40 = vmul.f32 %v521_v33, %v3073_v4 }
 0x125   : > { %498 = vrot.lane.b32.xlu0 %v486_v29, %s2691_s16  ;;  %496 = vrot.lane.b32.xlu1 %v485_v30, %s2691_s16  ;;  %v560_v38 = vpop.permute.xlu1 %559 }
 0x126   : > { %v563_v39 = vmul.f32 %v560_v38, %v3076_v5  ;;  %v562_v41 = vmul.f32 %v560_v38, %v3101_v20  ;;  %v565_v42 = vmul.f32 %v560_v38, %v3079_v6  ;;  %v564_v45 = vmul.f32 %v560_v38, %v3067_v3 }
 0x127   : > { %v566_v46 = vmul.f32 %v560_v38, %v3073_v4 }
 0x129   : > { %502 = vrot.lane.b32.xlu0 %v488_v31, %s2691_s16  ;;  %500 = vrot.lane.b32.xlu1 %v487_v32, %s2691_s16  ;;  %s2728_s16 = smov 108  }
 0x12a   : > { %v599_v43 = vpop.permute.xlu1 %598 }
 0x12b   : > { %v602_v44 = vmul.f32 %v599_v43, %v3076_v5  ;;  %v604_v47 = vmul.f32 %v599_v43, %v3079_v6  ;;  %v601_v50 = vmul.f32 %v599_v43, %v3101_v20  ;;  %v603_v51 = vmul.f32 %v599_v43, %v3067_v3 }
 0x12c   : > { %v605_v55 = vmul.f32 %v599_v43, %v3073_v4 }
 0x12d   : > { %533 = vrot.lane.b32.xlu0 %v523_v35, %s2692_s26  ;;  %535 = vrot.lane.b32.xlu1 %v524_v34, %s2692_s26  ;;  %v2702_v35 = vmov 14  }
 0x12f   : > { %v638_v48 = vpop.permute.xlu1 %637 }
 0x130   : > { %v641_v49 = vmul.f32 %v638_v48, %v3076_v5  ;;  %v643_v52 = vmul.f32 %v638_v48, %v3079_v6  ;;  %v640_v56 = vmul.f32 %v638_v48, %v3101_v20  ;;  %v642_v60 = vmul.f32 %v638_v48, %v3067_v3 }
 0x131   : > { %537 = vrot.lane.b32.xlu0 %v525_v36, %s2692_s26  ;;  %539 = vrot.lane.b32.xlu1 %v526_v37, %s2692_s26  ;;  %v644_v61 = vmul.f32 %v638_v48, %v3073_v4 }
 0x134   : > { %v677_v53 = vpop.permute.xlu1 %676 }
 0x135   : > { %541 = vrot.lane.b32.xlu0 %v527_v40, %s2692_s26  ;;  %574 = vrot.lane.b32.xlu1 %v563_v39, %s2693_s1  ;;  %v680_v54 = vmul.f32 %v677_v53, %v3076_v5  ;;  %v682_v57 = vmul.f32 %v677_v53, %v3079_v6  ;;  %v679_v13 = vmul.f32 %v677_v53, %v3101_v20  ;;  %s2729_s26 = smov 107  }
 0x136   : > { %v681_v14 = vmul.f32 %v677_v53, %v3067_v3  ;;  %v683_v18 = vmul.f32 %v677_v53, %v3073_v4 }
 0x139   : > { %572 = vrot.lane.b32.xlu0 %v562_v41, %s2693_s1  ;;  %578 = vrot.lane.b32.xlu1 %v565_v42, %s2693_s1  ;;  %v716_v58 = vpop.permute.xlu1 %715 }
 0x13a   : > { %v719_v59 = vmul.f32 %v716_v58, %v3076_v5  ;;  %v721_v62 = vmul.f32 %v716_v58, %v3079_v6  ;;  %v718_v19 = vmul.f32 %v716_v58, %v3101_v20  ;;  %v720_v24 = vmul.f32 %v716_v58, %v3067_v3 }
 0x13b   : > { %v722_v25 = vmul.f32 %v716_v58, %v3073_v4 }
 0x13d   : > { %576 = vrot.lane.b32.xlu0 %v564_v45, %s2693_s1  ;;  %613 = vrot.lane.b32.xlu1 %v602_v44, %s2694_s27 }
 0x13e   : > { %v755_v63 = vpop.permute.xlu1 %754 }
 0x13f   : > { %v758_v2 = vmul.f32 %v755_v63, %v3076_v5  ;;  %v760_v15 = vmul.f32 %v755_v63, %v3079_v6  ;;  %v757_v29 = vmul.f32 %v755_v63, %v3101_v20  ;;  %v759_v30 = vmul.f32 %v755_v63, %v3067_v3 }
 0x140   : > { %v761_v32 = vmul.f32 %v755_v63, %v3073_v4 }
 0x141   : > { %580 = vrot.lane.b32.xlu0 %v566_v46, %s2693_s1  ;;  %617 = vrot.lane.b32.xlu1 %v604_v47, %s2694_s27  ;;  %s2730_s1 = smov 106  }
 0x143   : > { %v794_v16 = vpop.permute.xlu1 %793 }
 0x144   : > { %v797_v17 = vmul.f32 %v794_v16, %v3076_v5  ;;  %v799_v21 = vmul.f32 %v794_v16, %v3079_v6  ;;  %v796_v33 = vmul.f32 %v794_v16, %v3101_v20  ;;  %v798_v34 = vmul.f32 %v794_v16, %v3067_v3 }
 0x145   : > { %611 = vrot.lane.b32.xlu0 %v601_v50, %s2694_s27  ;;  %652 = vrot.lane.b32.xlu1 %v641_v49, %s2695_s8  ;;  %v800_v36 = vmul.f32 %v794_v16, %v3073_v4 }
 0x148   : > { %v833_v22 = vpop.permute.xlu1 %832 }
 0x149   : > { %615 = vrot.lane.b32.xlu0 %v603_v51, %s2694_s27  ;;  %656 = vrot.lane.b32.xlu1 %v643_v52, %s2695_s8  ;;  %v836_v23 = vmul.f32 %v833_v22, %v3076_v5  ;;  %v838_v26 = vmul.f32 %v833_v22, %v3079_v6  ;;  %v835_v38 = vmul.f32 %v833_v22, %v3101_v20 }
 0x14a   : > { %v837_v40 = vmul.f32 %v833_v22, %v3067_v3  ;;  %v839_v42 = vmul.f32 %v833_v22, %v3073_v4 }
 0x14d   : > { %619 = vrot.lane.b32.xlu0 %v605_v55, %s2694_s27  ;;  %691 = vrot.lane.b32.xlu1 %v680_v54, %s2696_s29  ;;  %v872_v27 = vpop.permute.xlu1 %871  ;;  %s2731_s27 = smov 105  }
 0x14e   : > { %v875_v28 = vmul.f32 %v872_v27, %v3076_v5  ;;  %v877_v31 = vmul.f32 %v872_v27, %v3079_v6  ;;  %v874_v44 = vmul.f32 %v872_v27, %v3101_v20  ;;  %v876_v46 = vmul.f32 %v872_v27, %v3067_v3 }
 0x14f   : > { %v878_v48 = vmul.f32 %v872_v27, %v3073_v4 }
 0x151   : > { %650 = vrot.lane.b32.xlu0 %v640_v56, %s2695_s8  ;;  %695 = vrot.lane.b32.xlu1 %v682_v57, %s2696_s29 }
 0x155   : > { %654 = vrot.lane.b32.xlu0 %v642_v60, %s2695_s8  ;;  %730 = vrot.lane.b32.xlu1 %v719_v59, %s2697_s10 }
 0x159   : > { %658 = vrot.lane.b32.xlu0 %v644_v61, %s2695_s8  ;;  %734 = vrot.lane.b32.xlu1 %v721_v62, %s2697_s10  ;;  %s2732_s8 = smov 104  }
 0x15d   : > { %689 = vrot.lane.b32.xlu0 %v679_v13, %s2696_s29  ;;  %769 = vrot.lane.b32.xlu1 %v758_v2, %s2698_s18 }
 0x161   : > { %693 = vrot.lane.b32.xlu0 %v681_v14, %s2696_s29  ;;  %773 = vrot.lane.b32.xlu1 %v760_v15, %s2698_s18 }
 0x165   : > { %697 = vrot.lane.b32.xlu0 %v683_v18, %s2696_s29  ;;  %808 = vrot.lane.b32.xlu1 %v797_v17, %s2699_s20  ;;  %s2733_s29 = smov 103  }
 0x169   : > { %728 = vrot.lane.b32.xlu0 %v718_v19, %s2697_s10  ;;  %812 = vrot.lane.b32.xlu1 %v799_v21, %s2699_s20 }
 0x16d   : > { %732 = vrot.lane.b32.xlu0 %v720_v24, %s2697_s10  ;;  %847 = vrot.lane.b32.xlu1 %v836_v23, %s2700_s21  ;;  %v2704_v23 = vmov 15  }
 0x171   : > { %736 = vrot.lane.b32.xlu0 %v722_v25, %s2697_s10  ;;  %851 = vrot.lane.b32.xlu1 %v838_v26, %s2700_s21  ;;  %s2734_s10 = smov 102  }
 0x175   : > { %767 = vrot.lane.b32.xlu0 %v757_v29, %s2698_s18  ;;  %886 = vrot.lane.b32.xlu1 %v875_v28, %s2701_s17 }
 0x179   : > { %771 = vrot.lane.b32.xlu0 %v759_v30, %s2698_s18  ;;  %890 = vrot.lane.b32.xlu1 %v877_v31, %s2701_s17 }
 0x17d   : > { %775 = vrot.lane.b32.xlu0 %v761_v32, %s2698_s18  ;;  %910 = vperm.xlu1 %2420, %v3064_v1   ;;  %v2706_v32 = vmov 16   ;;  %s2735_s18 = smov 101  }
 0x181   : > { %806 = vrot.lane.b32.xlu0 %v796_v33, %s2699_s20  ;;  %2421 = vset.pattern.permute.xlu1 %v2702_v35 }
 0x185   : > { %810 = vrot.lane.b32.xlu0 %v798_v34, %s2699_s20 }
 0x189   : > { %814 = vrot.lane.b32.xlu0 %v800_v36, %s2699_s20  ;;  %s2736_s20 = smov 100  }
 0x18b   : > { %v3177_v37 = vpop.permute.xlu1 %455 }
 0x18d   : > { %845 = vrot.lane.b32.xlu0 %v835_v38, %s2700_s21 }
 0x18f   : > { %v3181_v39 = vpop.permute.xlu1 %457 }
 0x191   : > { %849 = vrot.lane.b32.xlu0 %v837_v40, %s2700_s21 }
 0x193   : > { %v3185_v41 = vpop.permute.xlu1 %461 }
 0x195   : > { %853 = vrot.lane.b32.xlu0 %v839_v42, %s2700_s21  ;;  %s2737_s21 = smov 99  }
 0x197   : > { %v3189_v43 = vpop.permute.xlu1 %496 }
 0x199   : > { %884 = vrot.lane.b32.xlu0 %v874_v44, %s2701_s17 }
 0x19b   : > { %v3193_v45 = vpop.permute.xlu1 %500 }
 0x19d   : > { %888 = vrot.lane.b32.xlu0 %v876_v46, %s2701_s17  ;;  %v3264_v46 = vpop.permute.xlu0 %459 }
 0x19f   : > { %v3197_v47 = vpop.permute.xlu1 %535 }
 0x1a1   : > { %892 = vrot.lane.b32.xlu0 %v878_v48, %s2701_s17  ;;  %v3267_v48 = vpop.permute.xlu0 %463  ;;  %s2738_s17 = smov 98  }
 0x1a3   : > { %v3201_v49 = vpop.permute.xlu1 %539 }
 0x1a7   : > { %v3203_v50 = vpop.permute.xlu1 %574 }
 0x1ab   : > { %v3205_v51 = vpop.permute.xlu1 %578 }
 0x1af   : > { %v3207_v52 = vpop.permute.xlu1 %613 }
 0x1b3   : > { %v3209_v53 = vpop.permute.xlu1 %617 }
 0x1b7   : > { %v3211_v54 = vpop.permute.xlu1 %652 }
 0x1bb   : > { %v3213_v55 = vpop.permute.xlu1 %656 }
 0x1bf   : > { %v3215_v56 = vpop.permute.xlu1 %691 }
 0x1c3   : > { %v3217_v57 = vpop.permute.xlu1 %695 }
 0x1c7   : > { %v3219_v58 = vpop.permute.xlu1 %730 }
 0x1cb   : > { %v3221_v59 = vpop.permute.xlu1 %734 }
 0x1cf   : > { %v3223_v60 = vpop.permute.xlu1 %769 }
 0x1d0   : > { %4169 = vst [vmem:[#allocation24_spill] sm:$0xff] %v3223_v60 }
 0x1d3   : > { %v3225_v61 = vpop.permute.xlu1 %773 }
 0x1d7   : > { %v3227_v62 = vpop.permute.xlu1 %808 }
 0x1d8   : > { %4170 = vst [vmem:[#allocation25_spill] sm:$0xff] %v3227_v62 }
 0x1db   : > { %v3229_v63 = vpop.permute.xlu1 %812 }
 0x1dc   : > { %4171 = vst [vmem:[#allocation26_spill] sm:$0xff] %v3229_v63 }
 0x1df   : > { %v3231_v2 = vpop.permute.xlu1 %847 }
 0x1e0   : > { %4172 = vst [vmem:[#allocation27_spill] sm:$0xff] %v3231_v2 }
 0x1e3   : > { %v3233_v13 = vpop.permute.xlu1 %851 }
 0x1e4   : > { %4173 = vst [vmem:[#allocation28_spill] sm:$0xff] %v3233_v13 }
 0x1e7   : > { %v3235_v14 = vpop.permute.xlu1 %886 }
 0x1e8   : > { %4174 = vst [vmem:[#allocation29_spill] sm:$0xff] %v3235_v14 }
 0x1eb   : > { %v3237_v15 = vpop.permute.xlu1 %890 }
 0x1ec   : > { %4175 = vst [vmem:[#allocation30_spill] sm:$0xff] %v3237_v15 }
 0x1fc   : > { %v911_v16 = vpop.permute.xlu1 %910 }
 0x1fd   : > { %v914_v17 = vmul.f32 %v911_v16, %v3076_v5  ;;  %v913_v18 = vmul.f32 %v911_v16, %v3101_v20  ;;  %v916_v19 = vmul.f32 %v911_v16, %v3079_v6  ;;  %v915_v21 = vmul.f32 %v911_v16, %v3067_v3 }
 0x1fe   : > { %v917_v22 = vmul.f32 %v911_v16, %v3073_v4  ;;  %v2708_v16 = vmov 17  }
 0x1ff   : > { %925 = vrot.lane.b32.xlu1 %v914_v17, %s2703_s6  ;;  %923 = vrot.lane.b32.xlu0 %v913_v18, %s2703_s6  ;;  %v3269_v17 = vpop.permute.xlu0 %494 }
 0x200   : > { %2424 = vset.pattern.permute.xlu0 %v2708_v16  ;;  %v505_v60 = vsel %vm504_vm3, %v3269_v17, %v3189_v43 }
 0x203   : > { %929 = vrot.lane.b32.xlu1 %v916_v19, %s2703_s6  ;;  %927 = vrot.lane.b32.xlu0 %v915_v21, %s2703_s6  ;;  %v3271_v18 = vpop.permute.xlu0 %498 }
 0x207   : > { %949 = vperm.xlu1 %2421, %v3064_v1   ;;  %931 = vrot.lane.b32.xlu0 %v917_v22, %s2703_s6  ;;  %v3273_v19 = vpop.permute.xlu0 %502 }
 0x20b   : > { %2422 = vset.pattern.permute.xlu1 %v2704_v23  ;;  %v3275_v21 = vpop.permute.xlu0 %533 }
 0x20f   : > { %v3277_v22 = vpop.permute.xlu0 %537 }
 0x213   : > { %v3279_v23 = vpop.permute.xlu0 %541 }
 0x271   : > { %v3245_v24 = vpop.permute.xlu1 %925 }
 0x272   : > { %4176 = vst [vmem:[#allocation31_spill] sm:$0xff] %v3245_v24 }
 0x275   : > { %v3247_v25 = vpop.permute.xlu1 %929 }
 0x276   : > { %4177 = vst [vmem:[#allocation32_spill] sm:$0xff] %v3247_v25 }
 0x286   : > { %v950_v26 = vpop.permute.xlu1 %949 }
 0x287   : > { %v953_v27 = vmul.f32 %v950_v26, %v3076_v5  ;;  %v952_v28 = vmul.f32 %v950_v26, %v3101_v20  ;;  %v955_v29 = vmul.f32 %v950_v26, %v3079_v6  ;;  %v954_v30 = vmul.f32 %v950_v26, %v3067_v3 }
 0x288   : > { %v956_v31 = vmul.f32 %v950_v26, %v3073_v4  ;;  %v3281_v26 = vpop.permute.xlu0 %572 }
 0x289   : > { %964 = vrot.lane.b32.xlu1 %v953_v27, %s2705_s13  ;;  %962 = vrot.lane.b32.xlu0 %v952_v28, %s2705_s13 }
 0x28c   : > { %v3283_v27 = vpop.permute.xlu0 %576 }
 0x28d   : > { %968 = vrot.lane.b32.xlu1 %v955_v29, %s2705_s13  ;;  %966 = vrot.lane.b32.xlu0 %v954_v30, %s2705_s13 }
 0x290   : > { %v3285_v28 = vpop.permute.xlu0 %580 }
 0x291   : > { %988 = vperm.xlu1 %2422, %v3064_v1   ;;  %970 = vrot.lane.b32.xlu0 %v956_v31, %s2705_s13  ;;  %s4285_s13 = sld [smem:[#allocation79_spill]] }
 0x294   : > { %v3287_v29 = vpop.permute.xlu0 %611 }
 0x295   : > { %2423 = vset.pattern.permute.xlu1 %v2706_v32 }
 0x298   : > { %v3289_v30 = vpop.permute.xlu0 %615 }
 0x29c   : > { %v3291_v31 = vpop.permute.xlu0 %619 }
 0x2a0   : > { %v3293_v32 = vpop.permute.xlu0 %650 }
 0x2fb   : > { %v3255_v33 = vpop.permute.xlu1 %964 }
 0x2fc   : > { %4178 = vst [vmem:[#allocation33_spill] sm:$0xff] %v3255_v33  ;;  %v2709_v33 = vmov 18  }
 0x2ff   : > { %v3257_v34 = vpop.permute.xlu1 %968 }
 0x300   : > { %4179 = vst [vmem:[#allocation34_spill] sm:$0xff] %v3257_v34 }
 0x310   : > { %v989_v35 = vpop.permute.xlu1 %988 }
 0x311   : > { %v992_v36 = vmul.f32 %v989_v35, %v3076_v5  ;;  %v991_v38 = vmul.f32 %v989_v35, %v3101_v20  ;;  %v994_v40 = vmul.f32 %v989_v35, %v3079_v6  ;;  %v993_v42 = vmul.f32 %v989_v35, %v3067_v3 }
 0x312   : > { %v995_v44 = vmul.f32 %v989_v35, %v3073_v4  ;;  %v3295_v35 = vpop.permute.xlu0 %654 }
 0x313   : > { %1003 = vrot.lane.b32.xlu1 %v992_v36, %s2707_s24  ;;  %1001 = vrot.lane.b32.xlu0 %v991_v38, %s2707_s24 }
 0x316   : > { %v3297_v36 = vpop.permute.xlu0 %658 }
 0x317   : > { %1007 = vrot.lane.b32.xlu1 %v994_v40, %s2707_s24  ;;  %1005 = vrot.lane.b32.xlu0 %v993_v42, %s2707_s24 }
 0x31a   : > { %v3299_v38 = vpop.permute.xlu0 %689 }
 0x31b   : > { %1027 = vperm.xlu1 %2423, %v3064_v1   ;;  %1009 = vrot.lane.b32.xlu0 %v995_v44, %s2707_s24  ;;  %s2739_s24 = smov 97  }
 0x31e   : > { %v3301_v40 = vpop.permute.xlu0 %693 }
 0x31f   : > { %2425 = vset.pattern.permute.xlu1 %v2709_v33 }
 0x322   : > { %v3303_v42 = vpop.permute.xlu0 %697 }
 0x326   : > { %v3307_v16 = vpop.permute.xlu0 %728 }
 0x32a   : > { %v3311_v10 = vpop.permute.xlu0 %732 }
 0x32e   : > { %v3318_v0 = vpop.permute.xlu0 %736 }
 0x332   : > { %v3325_v34 = vpop.permute.xlu0 %767 }
 0x333   : > { %4182 = vst [vmem:[#allocation37_spill] sm:$0xff] %v3325_v34 }
 0x385   : > { %v3305_v44 = vpop.permute.xlu1 %1003 }
 0x386   : > { %4180 = vst [vmem:[#allocation35_spill] sm:$0xff] %v3305_v44 }
 0x389   : > { %v3309_v12 = vpop.permute.xlu1 %1007 }
 0x38a   : > { %4181 = vst [vmem:[#allocation36_spill] sm:$0xff] %v3309_v12 }
 0x39a   : > { %v1028_v9 = vpop.permute.xlu1 %1027 }
 0x39b   : > { %v1031_v11 = vmul.f32 %v1028_v9, %v3067_v3  ;;  %v1030_v7 = vmul.f32 %v1028_v9, %v3076_v5  ;;  %v1033_v12 = vmul.f32 %v1028_v9, %v3073_v4  ;;  %v1032_v44 = vmul.f32 %v1028_v9, %v3079_v6 }
 0x39d   : > { %1040 = vrot.lane.b32.xlu1 %v1031_v11, %s2677_s9  ;;  %1038 = vrot.lane.b32.xlu0 %v1030_v7, %s2677_s9  ;;  %v3328_v7 = vpop.permute.xlu0 %771 }
 0x3a1   : > { %1044 = vrot.lane.b32.xlu1 %v1033_v12, %s2677_s9  ;;  %1042 = vrot.lane.b32.xlu0 %v1032_v44, %s2677_s9  ;;  %v3330_v11 = vpop.permute.xlu0 %775 }
 0x3a5   : > { %1066 = vperm.xlu0 %2424, %v3064_v1   ;;  %v3332_v25 = vpop.permute.xlu0 %806 }
 0x3a6   : > { %4183 = vst [vmem:[#allocation38_spill] sm:$0xff] %v3332_v25 }
 0x3a9   : > { %v3334_v8 = vpop.permute.xlu0 %810 }
 0x3aa   : > { %4184 = vst [vmem:[#allocation39_spill] sm:$0xff] %v3334_v8 }
 0x3ad   : > { %v3336_v24 = vpop.permute.xlu0 %814 }
 0x3ae   : > { %4185 = vst [vmem:[#allocation40_spill] sm:$0xff] %v3336_v24 }
 0x3b1   : > { %v3338_v9 = vpop.permute.xlu0 %845 }
 0x3b2   : > { %4186 = vst [vmem:[#allocation41_spill] sm:$0xff] %v3338_v9 }
 0x3b5   : > { %v3340_v12 = vpop.permute.xlu0 %849 }
 0x3b6   : > { %4187 = vst [vmem:[#allocation42_spill] sm:$0xff] %v3340_v12 }
 0x3b9   : > { %v3342_v44 = vpop.permute.xlu0 %853 }
 0x3ba   : > { %4188 = vst [vmem:[#allocation43_spill] sm:$0xff] %v3342_v44 }
 0x3bd   : > { %v3344_v15 = vpop.permute.xlu0 %884 }
 0x3be   : > { %4189 = vst [vmem:[#allocation44_spill] sm:$0xff] %v3344_v15 }
 0x3c1   : > { %v3346_v14 = vpop.permute.xlu0 %888 }
 0x3c2   : > { %4190 = vst [vmem:[#allocation45_spill] sm:$0xff] %v3346_v14 }
 0x3c5   : > { %v3348_v13 = vpop.permute.xlu0 %892 }
 0x3c6   : > { %4191 = vst [vmem:[#allocation46_spill] sm:$0xff] %v3348_v13 }
 0x3c9   : > { %v3350_v2 = vpop.permute.xlu0 %923 }
 0x3ca   : > { %4192 = vst [vmem:[#allocation47_spill] sm:$0xff] %v3350_v2 }
 0x3cd   : > { %v3352_v33 = vpop.permute.xlu0 %927 }
 0x3ce   : > { %4193 = vst [vmem:[#allocation48_spill] sm:$0xff] %v3352_v33 }
 0x3d1   : > { %v3354_v63 = vpop.permute.xlu0 %931 }
 0x3d2   : > { %4194 = vst [vmem:[#allocation49_spill] sm:$0xff] %v3354_v63 }
 0x3d5   : > { %v3356_v8 = vpop.permute.xlu0 %962 }
 0x3d6   : > { %4195 = vst [vmem:[#allocation50_spill] sm:$0xff] %v3356_v8  ;;  %v3374_v8 = vld [vmem:[#allocation2 + $0x28] sm:$0xff] }
 0x3d9   : > { %v3358_v24 = vpop.permute.xlu0 %966 }
 0x3da   : > { %4196 = vst [vmem:[#allocation51_spill] sm:$0xff] %v3358_v24 }
 0x3dd   : > { %v3360_v9 = vpop.permute.xlu0 %970 }
 0x3de   : > { %4197 = vst [vmem:[#allocation52_spill] sm:$0xff] %v3360_v9 }
 0x3e1   : > { %v3362_v12 = vpop.permute.xlu0 %1001 }
 0x3e2   : > { %4198 = vst [vmem:[#allocation53_spill] sm:$0xff] %v3362_v12 }
 0x3e5   : > { %v3364_v44 = vpop.permute.xlu0 %1005 }
 0x3e6   : > { %4199 = vst [vmem:[#allocation54_spill] sm:$0xff] %v3364_v44 }
 0x3e9   : > { %v3366_v15 = vpop.permute.xlu0 %1009 }
 0x3ea   : > { %4200 = vst [vmem:[#allocation55_spill] sm:$0xff] %v3366_v15 }
 0x40f   : > { %v3368_v14 = vpop.permute.xlu0 %1038  ;;  %v3380_v15 = vpop.permute.xlu1 %1040 }
 0x410   : > { %4201 = vst [vmem:[#allocation56_spill] sm:$0xff] %v3368_v14  ;;  %4203 = vst [vmem:[#allocation58_spill] sm:$0xff] %v3380_v15 }
 0x413   : > { %v3370_v13 = vpop.permute.xlu0 %1042  ;;  %v3382_v9 = vpop.permute.xlu1 %1044 }
 0x414   : > { %4202 = vst [vmem:[#allocation57_spill] sm:$0xff] %v3370_v13  ;;  %v2711_v13 = vmov 19   ;;  %4204 = vst [vmem:[#allocation59_spill] sm:$0xff] %v3382_v9 }
 0x424   : > { %v1067_v2 = vpop.permute.xlu0 %1066 }
 0x425   : > { %v1071_v33 = vmul.f32 %v1067_v2, %v3079_v6  ;;  %v1069_v63 = vmul.f32 %v1067_v2, %v3076_v5  ;;  %v1073_v12 = vmul.f32 %v1067_v2, %v3374_v8  ;;  %v1070_v44 = vmul.f32 %v1067_v2, %v3067_v3 }
 0x426   : > { %v1072_v14 = vmul.f32 %v1067_v2, %v3073_v4 }
 0x427   : > { %1083 = vrot.lane.b32.xlu0 %v1071_v33, %s2710_s14  ;;  %1079 = vrot.lane.b32.xlu1 %v1069_v63, %s2710_s14 }
 0x42b   : > { %1087 = vrot.lane.b32.xlu0 %v1073_v12, %s2710_s14  ;;  %1081 = vrot.lane.b32.xlu1 %v1070_v44, %s2710_s14 }
 0x42f   : > { %1085 = vrot.lane.b32.xlu1 %v1072_v14, %s2710_s14  ;;  %s2742_s14 = smov [#allocation9]  }
 0x433   : > { %1105 = vperm.xlu1 %2425, %v3064_v1  }
 0x437   : > { %2426 = vset.pattern.permute.xlu1 %v2711_v13 }
 0x499   : > { %v3384_v24 = vpop.permute.xlu1 %1079 }
 0x49a   : > { %4205 = vst [vmem:[#allocation60_spill] sm:$0xff] %v3384_v24  ;;  %v2713_v24 = vmov 20  }
 0x49d   : > { %v3386_v63 = vpop.permute.xlu1 %1081 }
 0x49e   : > { %4206 = vst [vmem:[#allocation61_spill] sm:$0xff] %v3386_v63 }
 0x4a1   : > { %v3388_v33 = vpop.permute.xlu1 %1085 }
 0x4a2   : > { %4207 = vst [vmem:[#allocation62_spill] sm:$0xff] %v3388_v33  ;;  %v2714_v33 = vmov 21  }
 0x4a3   : > { %2428 = vset.pattern.permute.xlu0 %v2714_v33  ;;  %v2716_v33 = vmov 22  }
 0x4b2   : > { %v1106_v25 = vpop.permute.xlu1 %1105 }
 0x4b3   : > { %v1109_v12 = vmul.f32 %v1106_v25, %v3067_v3  ;;  %v1108_v2 = vmul.f32 %v1106_v25, %v3076_v5  ;;  %v1111_v13 = vmul.f32 %v1106_v25, %v3073_v4  ;;  %v1110_v14 = vmul.f32 %v1106_v25, %v3079_v6 }
 0x4b4   : > { %v1112_v44 = vmul.f32 %v1106_v25, %v3374_v8 }
 0x4b5   : > { %1120 = vrot.lane.b32.xlu1 %v1109_v12, %s2712_s12  ;;  %1118 = vrot.lane.b32.xlu0 %v1108_v2, %s2712_s12 }
 0x4b9   : > { %1124 = vrot.lane.b32.xlu1 %v1111_v13, %s2712_s12  ;;  %1122 = vrot.lane.b32.xlu0 %v1110_v14, %s2712_s12  ;;  %v2717_v14 = vmov 24  }
 0x4bd   : > { %1144 = vperm.xlu1 %2426, %v3064_v1   ;;  %1126 = vrot.lane.b32.xlu0 %v1112_v44, %s2712_s12  ;;  %v2719_v44 = vmov 27   ;;  %s2549_s12 = sshll.u32 %s2742_s14, 4  ;;  %s2550_s12 = int_to_ptr.vmem [resolvable:$false] %s2549_s12 }
 0x4c1   : > { %2427 = vset.pattern.permute.xlu1 %v2713_v24 }
 0x527   : > { %v3396_v63 = vpop.permute.xlu1 %1120 }
 0x528   : > { %4208 = vst [vmem:[#allocation63_spill] sm:$0xff] %v3396_v63 }
 0x52b   : > { %v3398_v9 = vpop.permute.xlu1 %1124 }
 0x52c   : > { %4209 = vst [vmem:[#allocation64_spill] sm:$0xff] %v3398_v9 }
 0x53c   : > { %v1145_v12 = vpop.permute.xlu1 %1144 }
 0x53d   : > { %v1148_v2 = vmul.f32 %v1145_v12, %v3067_v3  ;;  %v1147_v15 = vmul.f32 %v1145_v12, %v3076_v5  ;;  %v1150_v25 = vmul.f32 %v1145_v12, %v3073_v4  ;;  %v1149_v13 = vmul.f32 %v1145_v12, %v3079_v6 }
 0x53e   : > { %v1151_v24 = vmul.f32 %v1145_v12, %v3374_v8  ;;  %v2720_v12 = vmov 25  }
 0x53f   : > { %1159 = vrot.lane.b32.xlu1 %v1148_v2, %s2715_s23  ;;  %1157 = vrot.lane.b32.xlu0 %v1147_v15, %s2715_s23  ;;  %v2718_v15 = vmov 23   ;;  %v2721_v2 = vmov 30  }
 0x543   : > { %1163 = vrot.lane.b32.xlu1 %v1150_v25, %s2715_s23  ;;  %1161 = vrot.lane.b32.xlu0 %v1149_v13, %s2715_s23  ;;  %v2722_v25 = vmov 26   ;;  %v4122_v13 = vmov 0  }
 0x547   : > { %1183 = vperm.xlu1 %2427, %v3064_v1   ;;  %1165 = vrot.lane.b32.xlu0 %v1151_v24, %s2715_s23  ;;  %v2724_v24 = vmov 28   ;;  %s4274_s23 = sld [smem:[#allocation77_spill]] }
 0x54b   : > { %1222 = vperm.xlu0 %2428, %v3064_v1   ;;  %2429 = vset.pattern.permute.xlu1 %v2716_v33  ;;  %v2725_v33 = vmov 29  }
 0x54c   : > { %1261 = vperm.xlu1 %2429, %v3064_v1  }
 0x54f   : > { %2431 = vset.pattern.permute.xlu0 %v2717_v14  ;;  %v2726_v14 = vmov 31  }
 0x550   : > { %1339 = vperm.xlu0 %2431, %v3064_v1   ;;  %2430 = vset.pattern.permute.xlu1 %v2718_v15  ;;  %v2727_v15 = vmov 32  }
 0x551   : > { %1300 = vperm.xlu1 %2430, %v3064_v1  }
 0x554   : > { %2434 = vset.pattern.permute.xlu0 %v2719_v44  ;;  %v3421_v44 = vpop.permute.xlu0 %1083 }
 0x555   : > { %1456 = vperm.xlu0 %2434, %v3064_v1   ;;  %2432 = vset.pattern.permute.xlu1 %v2720_v12  ;;  %4210 = vst [vmem:[#allocation65_spill] sm:$0xff] %v3421_v44 }
 0x556   : > { %1378 = vperm.xlu1 %2432, %v3064_v1  }
 0x558   : > { %v3423_v12 = vpop.permute.xlu0 %1087 }
 0x559   : > { %2437 = vset.pattern.permute.xlu0 %v2721_v2  ;;  %4211 = vst [vmem:[#allocation66_spill] sm:$0xff] %v3423_v12 }
 0x55a   : > { %1573 = vperm.xlu0 %2437, %v3064_v1   ;;  %2433 = vset.pattern.permute.xlu1 %v2722_v25 }
 0x55b   : > { %1417 = vperm.xlu1 %2433, %v3064_v1  }
 0x55c   : > { %v3425_v2 = vpop.permute.xlu0 %1118 }
 0x55d   : > { %4212 = vst [vmem:[#allocation67_spill] sm:$0xff] %v3425_v2 }
 0x55e   : > { %2438 = vset.pattern.permute.xlu0 %v4122_v13 }
 0x55f   : > { %428 = vperm.xlu0 %2438, %v3064_v1   ;;  %2435 = vset.pattern.permute.xlu1 %v2724_v24 }
 0x560   : > { %1495 = vperm.xlu1 %2435, %v3064_v1   ;;  %v3427_v25 = vpop.permute.xlu0 %1122 }
 0x561   : > { %4213 = vst [vmem:[#allocation68_spill] sm:$0xff] %v3427_v25 }
 0x564   : > { %2436 = vset.pattern.permute.xlu1 %v2725_v33  ;;  %v3429_v24 = vpop.permute.xlu0 %1126 }
 0x565   : > { %1534 = vperm.xlu1 %2436, %v3064_v1   ;;  %4214 = vst [vmem:[#allocation69_spill] sm:$0xff] %v3429_v24 }
 0x569   : > { %2439 = vset.pattern.permute.xlu1 %v2726_v14 }
 0x56a   : > { %1612 = vperm.xlu1 %2439, %v3064_v1  }
 0x56e   : > { %2440 = vset.pattern.permute.xlu1 %v2727_v15 }
 0x56f   : > { %1651 = vperm.xlu1 %2440, %v3064_v1  }
 0x573   : > { %2441 = vset.pattern.permute.xlu1 %v4122_v13 }
 0x5b1   : > { %v3431_v33 = vpop.permute.xlu0 %1157  ;;  %v3433_v14 = vpop.permute.xlu1 %1159 }
 0x5b2   : > { %4215 = vst [vmem:[#allocation70_spill] sm:$0xff] %v3431_v33  ;;  %4216 = vst [vmem:[#allocation71_spill] sm:$0xff] %v3433_v14 }
 0x5b5   : > { %v3435_v9 = vpop.permute.xlu0 %1161  ;;  %v3437_v15 = vpop.permute.xlu1 %1163 }
 0x5b6   : > { %4217 = vst [vmem:[#allocation72_spill] sm:$0xff] %v3435_v9  ;;  %4218 = vst [vmem:[#allocation73_spill] sm:$0xff] %v3437_v15 }
 0x5b9   : > { %v3439_v1 = vpop.permute.xlu0 %1165 }
 0x5ba   : > { %4219 = vst [vmem:[#allocation74_spill] sm:$0xff] %v3439_v1 }
 0x5c6   : > { %v1184_v13 = vpop.permute.xlu1 %1183 }
 0x5c7   : > { %v1187_v63 = vmul.f32 %v1184_v13, %v3067_v3  ;;  %v1186_v12 = vmul.f32 %v1184_v13, %v3076_v5  ;;  %v1189_v24 = vmul.f32 %v1184_v13, %v3073_v4  ;;  %v1188_v33 = vmul.f32 %v1184_v13, %v3079_v6 }
 0x5c8   : > { %v1190_v15 = vmul.f32 %v1184_v13, %v3374_v8 }
 0x5c9   : > { %1198 = vrot.lane.b32.xlu1 %v1187_v63, %s2728_s16  ;;  %1196 = vrot.lane.b32.xlu0 %v1186_v12, %s2728_s16 }
 0x5ca   : > { %v1223_v2 = vpop.permute.xlu0 %1222 }
 0x5cb   : > { %v1225_v14 = vmul.f32 %v1223_v2, %v3076_v5  ;;  %v1226_v1 = vmul.f32 %v1223_v2, %v3067_v3  ;;  %v1227_v9 = vmul.f32 %v1223_v2, %v3079_v6  ;;  %v1262_v63 = vpop.permute.xlu1 %1261  ;;  %v1228_v12 = vmul.f32 %v1223_v2, %v3073_v4 }
 0x5cc   : > { %v1229_v25 = vmul.f32 %v1223_v2, %v3374_v8  ;;  %v1265_v13 = vmul.f32 %v1262_v63, %v3067_v3  ;;  %v1268_v2 = vmul.f32 %v1262_v63, %v3374_v8 }
 0x5cd   : > { %1202 = vrot.lane.b32.xlu1 %v1189_v24, %s2728_s16  ;;  %1200 = vrot.lane.b32.xlu0 %v1188_v33, %s2728_s16  ;;  %v1264_v24 = vmul.f32 %v1262_v63, %v3076_v5 }
 0x5cf   : > { %v1340_v33 = vpop.permute.xlu0 %1339 }
 0x5d1   : > { %1204 = vrot.lane.b32.xlu0 %v1190_v15, %s2728_s16  ;;  %1235 = vrot.lane.b32.xlu1 %v1225_v14, %s2729_s26  ;;  %v1266_v14 = vmul.f32 %v1262_v63, %v3079_v6  ;;  %v1301_v15 = vpop.permute.xlu1 %1300 }
 0x5d5   : > { %1237 = vrot.lane.b32.xlu0 %v1226_v1, %s2729_s26  ;;  %1239 = vrot.lane.b32.xlu1 %v1227_v9, %s2729_s26  ;;  %v1267_v9 = vmul.f32 %v1262_v63, %v3073_v4  ;;  %v1303_v1 = vmul.f32 %v1301_v15, %v3076_v5  ;;  %v1342_v63 = vmul.f32 %v1340_v33, %v3076_v5 }
 0x5d9   : > { %1241 = vrot.lane.b32.xlu0 %v1228_v12, %s2729_s26  ;;  %1243 = vrot.lane.b32.xlu1 %v1229_v25, %s2729_s26  ;;  %v3457_v25 = vpop.permute.xlu0 %1456  ;;  %v1304_v12 = vmul.f32 %v1301_v15, %v3067_v3 }
 0x5dd   : > { %1274 = vrot.lane.b32.xlu0 %v1264_v24, %s2730_s1  ;;  %1276 = vrot.lane.b32.xlu1 %v1265_v13, %s2730_s1  ;;  %v1305_v24 = vmul.f32 %v1301_v15, %v3079_v6  ;;  %v3461_v13 = vpop.permute.xlu0 %1573 }
 0x5de   : > { %4220 = vst [vmem:[#allocation75_spill] sm:$0xff] %v3461_v13  ;;  %v1379_v13 = vpop.permute.xlu1 %1378 }
 0x5e1   : > { %1278 = vrot.lane.b32.xlu0 %v1266_v14, %s2730_s1  ;;  %1280 = vrot.lane.b32.xlu1 %v1267_v9, %s2730_s1  ;;  %v1306_v14 = vmul.f32 %v1301_v15, %v3073_v4  ;;  %v1307_v9 = vmul.f32 %v1301_v15, %v3374_v8  ;;  %v429_v44 = vpop.permute.xlu0 %428 }
 0x5e2   : > { %v431_v15 = vmul.f32 %v429_v44, %v3101_v20  ;;  %v435_v20 = vmul.f32 %v429_v44, %v3073_v4 }
 0x5e5   : > { %1282 = vrot.lane.b32.xlu0 %v1268_v2, %s2730_s1  ;;  %1313 = vrot.lane.b32.xlu1 %v1303_v1, %s2731_s27  ;;  %v1343_v2 = vmul.f32 %v1340_v33, %v3067_v3  ;;  %v433_v1 = vmul.f32 %v429_v44, %v3067_v3  ;;  %v469_v3 = vsel %vm465_vm2, %v3185_v41, %v3267_v48  ;;  %s4282_s1 = sld [smem:[#allocation78_spill]] }
 0x5e9   : > { %1315 = vrot.lane.b32.xlu0 %v1304_v12, %s2731_s27  ;;  %1317 = vrot.lane.b32.xlu1 %v1305_v24, %s2731_s27  ;;  %v434_v12 = vmul.f32 %v429_v44, %v3079_v6  ;;  %v1344_v24 = vmul.f32 %v1340_v33, %v3079_v6  ;;  %v1381_v6 = vmul.f32 %v1379_v13, %v3076_v5 }
 0x5eb   : > { %v478_v62 = vadd.f32 %v469_v3, %v434_v12  ;;  %v467_v12 = vsel %vm465_vm2, %v3181_v39, %v3264_v46  ;;  %v3517_v3 = vld [vmem:[#allocation2 + $0x20] sm:$0xff] }
 0x5ed   : > { %1319 = vrot.lane.b32.xlu0 %v1306_v14, %s2731_s27  ;;  %1321 = vrot.lane.b32.xlu1 %v1307_v9, %s2731_s27  ;;  %v1345_v14 = vmul.f32 %v1340_v33, %v3073_v4  ;;  %v466_v9 = vsel %vm465_vm2, %v3177_v37, %v3181_v39  ;;  %v432_v37 = vmul.f32 %v429_v44, %v3076_v5  ;;  %s2741_s27 = smov 16  }
 0x5ee   : > { %v475_v34 = vadd.f32 %v466_v9, %v431_v15  ;;  %v508_v4 = vsel %vm504_vm3, %v3193_v45, %v3273_v19  ;;  %v547_v39 = vsel %vm543_vm4, %v3201_v49, %v3279_v23 }
 0x5ef   : > { %v517_v44 = vadd.f32 %v508_v4, %v478_v62  ;;  %v476_v9 = vadd.f32 %v467_v12, %v432_v37  ;;  %v544_v62 = vsel %vm543_vm4, %v3275_v21, %v3197_v47  ;;  %v506_v21 = vsel %vm504_vm3, %v3189_v43, %v3271_v18 }
 0x5f0   : > { %v514_v15 = vadd.f32 %v505_v60, %v475_v34  ;;  %v1418_v60 = vpop.permute.xlu1 %1417  ;;  %v585_v37 = vsel %vm582_vm5, %v3283_v27, %v3205_v51 }
 0x5f1   : > { %1352 = vrot.lane.b32.xlu0 %v1342_v63, %s2732_s8  ;;  %1354 = vrot.lane.b32.xlu1 %v1343_v2, %s2732_s8  ;;  %v468_v63 = vsel %vm465_vm2, %v3264_v46, %v3185_v41  ;;  %v507_v41 = vsel %vm504_vm3, %v3271_v18, %v3193_v45  ;;  %v583_v18 = vsel %vm582_vm5, %v3281_v26, %v3203_v50  ;;  %vm1046_vm2 = vcmask 916480  }
 0x5f2   : > { %v477_v2 = vadd.f32 %v468_v63, %v433_v1  ;;  %v3496_v1 = vld [vmem:[#allocation2 + $0x10] sm:$0xff]  ;;  %v556_v63 = vadd.f32 %v547_v39, %v517_v44  ;;  %v624_v26 = vsel %vm621_vm6, %v3289_v30, %v3209_v53  ;;  %vm1089_vm3 = vcmask 908288  }
 0x5f3   : > { %v1382_v17 = vmul.f32 %v3496_v1, %v1379_v13  ;;  %v1421_v43 = vmul.f32 %v3496_v1, %v1418_v60 }
 0x5f4   : > { %v516_v5 = vadd.f32 %v507_v41, %v477_v2  ;;  %v1385_v2 = vmul.f32 %v1379_v13, %v3374_v8  ;;  %v586_v41 = vsel %vm582_vm5, %v3205_v51, %v3285_v28  ;;  %v622_v51 = vsel %vm621_vm6, %v3287_v29, %v3207_v52 }
 0x5f5   : > { %1356 = vrot.lane.b32.xlu0 %v1344_v24, %s2732_s8  ;;  %1358 = vrot.lane.b32.xlu1 %v1345_v14, %s2732_s8  ;;  %v1346_v24 = vmul.f32 %v1340_v33, %v3374_v8  ;;  %v479_v33 = vadd.f32 %v3267_v48, %v435_v20  ;;  %v3502_v14 = vld [vmem:[#allocation2 + $0x18] sm:$0xff]  ;;  %v546_v48 = vsel %vm543_vm4, %v3277_v22, %v3201_v49 }
 0x5f6   : > { %v1383_v45 = vmul.f32 %v3502_v14, %v1379_v13  ;;  %v555_v46 = vadd.f32 %v546_v48, %v516_v5  ;;  %v553_v20 = vadd.f32 %v544_v62, %v514_v15  ;;  %v515_v49 = vadd.f32 %v506_v21, %v476_v9 }
 0x5f7   : > { %v518_v34 = vadd.f32 %v3273_v19, %v479_v33  ;;  %v595_v33 = vadd.f32 %v586_v41, %v556_v63  ;;  %v545_v5 = vsel %vm543_vm4, %v3197_v47, %v3277_v22  ;;  %v1422_v15 = vmul.f32 %v3502_v14, %v1418_v60 }
 0x5f8   : > { %v594_v4 = vadd.f32 %v585_v37, %v555_v46  ;;  %v592_v44 = vadd.f32 %v583_v18, %v553_v20  ;;  %v584_v29 = vsel %vm582_vm5, %v3203_v50, %v3283_v27  ;;  %v1423_v9 = vmul.f32 %v3517_v3, %v1418_v60 }
 0x5f9   : > { %1360 = vrot.lane.b32.xlu0 %v1346_v24, %s2732_s8  ;;  %1391 = vrot.lane.b32.xlu1 %v1381_v6, %s2733_s29  ;;  %v1384_v6 = vmul.f32 %v3517_v3, %v1379_v13  ;;  %v3525_v24 = vld [vmem:[#allocation2 + $0x8] sm:$0xff]  ;;  %v557_v13 = vadd.f32 %v3279_v23, %v518_v34  ;;  %v625_v23 = vsel %vm621_vm6, %v3209_v53, %v3291_v31  ;;  %vm1128_vm4 = vcmask 900096  }
 0x5fa   : > { %v1420_v19 = vmul.f32 %v3525_v24, %v1418_v60  ;;  %v633_v22 = vadd.f32 %v624_v26, %v594_v4  ;;  %v634_v12 = vadd.f32 %v625_v23, %v595_v33  ;;  %v661_v53 = vsel %vm660_vm7, %v3293_v32, %v3211_v54 }
 0x5fb   : > { %v596_v47 = vadd.f32 %v3285_v28, %v557_v13  ;;  %v663_v28 = vsel %vm660_vm7, %v3295_v35, %v3213_v55  ;;  %v664_v48 = vsel %vm660_vm7, %v3213_v55, %v3297_v36  ;;  %v1459_v50 = vmul.f32 %v3525_v24, %v3457_v25 }
 0x5fc   : > { %v672_v39 = vadd.f32 %v663_v28, %v633_v22  ;;  %v673_v34 = vadd.f32 %v664_v48, %v634_v12  ;;  %v1424_v46 = vmul.f32 %v1418_v60, %v3374_v8  ;;  %v623_v32 = vsel %vm621_vm6, %v3207_v52, %v3289_v30  ;;  %v4224_v12 = vld [vmem:[#allocation38_spill] sm:$0xff] }
 0x5fd   : > { %1393 = vrot.lane.b32.xlu0 %v1382_v17, %s2733_s29  ;;  %1395 = vrot.lane.b32.xlu1 %v1383_v45, %s2733_s29  ;;  %v554_v17 = vadd.f32 %v545_v5, %v515_v49  ;;  %v631_v45 = vadd.f32 %v622_v51, %v592_v44  ;;  %v635_v27 = vadd.f32 %v3291_v31, %v596_v47  ;;  %v4222_v44 = vld [vmem:[#allocation37_spill] sm:$0xff]  ;;  %vm1206_vm5 = vcmask 883712  }
 0x5fe   : > { %v700_v55 = vsel %vm699_vm8, %v3299_v38, %v3215_v56  ;;  %v702_v21 = vsel %vm699_vm8, %v3301_v40, %v3217_v57  ;;  %v703_v31 = vsel %vm699_vm8, %v3217_v57, %v3303_v42  ;;  %v1460_v20 = vmul.f32 %v3496_v1, %v3457_v25 }
 0x5ff   : > { %v593_v62 = vadd.f32 %v584_v29, %v554_v17  ;;  %v670_v63 = vadd.f32 %v661_v53, %v631_v45  ;;  %v674_v52 = vadd.f32 %v3297_v36, %v635_v27  ;;  %v711_v30 = vadd.f32 %v702_v21, %v672_v39  ;;  %v4225_v29 = vld [vmem:[#allocation26_spill] sm:$0xff]  ;;  %v4226_v45 = vld [vmem:[#allocation39_spill] sm:$0xff] }
 0x600   : > { %v712_v60 = vadd.f32 %v703_v31, %v673_v34  ;;  %v662_v38 = vsel %vm660_vm7, %v3211_v54, %v3295_v35  ;;  %v1461_v49 = vmul.f32 %v3502_v14, %v3457_v25  ;;  %v739_v57 = vsel %vm738_vm9, %v3307_v16, %v3219_v58  ;;  %v1496_v54 = vpop.permute.xlu1 %1495  ;;  %v4232_v31 = vld [vmem:[#allocation43_spill] sm:$0xff] }
 0x601   : > { %1397 = vrot.lane.b32.xlu0 %v1384_v6, %s2733_s29  ;;  %1399 = vrot.lane.b32.xlu1 %v1385_v2, %s2733_s29  ;;  %v632_v6 = vadd.f32 %v623_v32, %v593_v62  ;;  %v709_v2 = vadd.f32 %v700_v55, %v670_v63  ;;  %v741_v36 = vsel %vm738_vm9, %v3311_v10, %v3221_v59  ;;  %v4227_v62 = vld [vmem:[#allocation40_spill] sm:$0xff]  ;;  %v4229_v32 = vld [vmem:[#allocation41_spill] sm:$0xff]  ;;  %v4231_v55 = vld [vmem:[#allocation42_spill] sm:$0xff]  ;;  %vm1167_vm6 = vcmask 891904  }
 0x602   : > { %v742_v37 = vsel %vm738_vm9, %v3221_v59, %v3318_v0  ;;  %v713_v35 = vadd.f32 %v3303_v42, %v674_v52  ;;  %v750_v41 = vadd.f32 %v741_v36, %v711_v30  ;;  %v1462_v18 = vmul.f32 %v3517_v3, %v3457_v25 }
 0x603   : > { %v701_v16 = vsel %vm699_vm8, %v3215_v56, %v3301_v40  ;;  %v748_v13 = vadd.f32 %v739_v57, %v709_v2  ;;  %v1463_v4 = vmul.f32 %v3457_v25, %v3374_v8  ;;  %v1498_v59 = vmul.f32 %v3525_v24, %v1496_v54  ;;  %v4221_v40 = vld [vmem:[#allocation24_spill] sm:$0xff] }
 0x604   : > { %v780_v42 = vsel %vm777_vm10, %v3328_v7, %v3225_v61  ;;  %v781_v5 = vsel %vm777_vm10, %v3225_v61, %v3330_v11  ;;  %v1499_v56 = vmul.f32 %v3496_v1, %v1496_v54  ;;  %v778_v25 = vsel %vm777_vm10, %v4222_v44, %v4221_v40  ;;  %v4223_v61 = vld [vmem:[#allocation25_spill] sm:$0xff]  ;;  %v4234_v57 = vld [vmem:[#allocation44_spill] sm:$0xff] }
 0x605   : > { %1430 = vrot.lane.b32.xlu0 %v1420_v19, %s2734_s10  ;;  %1432 = vrot.lane.b32.xlu1 %v1421_v43, %s2734_s10  ;;  %v671_v19 = vadd.f32 %v662_v38, %v632_v6  ;;  %v751_v43 = vadd.f32 %v742_v37, %v712_v60  ;;  %v752_v17 = vadd.f32 %v3318_v0, %v713_v35  ;;  %v4230_v6 = vld [vmem:[#allocation28_spill] sm:$0xff]  ;;  %v4235_v37 = vld [vmem:[#allocation30_spill] sm:$0xff]  ;;  %v4236_v35 = vld [vmem:[#allocation45_spill] sm:$0xff]  ;;  %vm1245_vm7 = vcmask 875520  }
 0x606   : > { %v789_v51 = vadd.f32 %v780_v42, %v750_v41  ;;  %v740_v23 = vsel %vm738_vm9, %v3219_v58, %v3311_v10  ;;  %v787_v47 = vadd.f32 %v778_v25, %v748_v13  ;;  %v820_v0 = vsel %vm816_vm11, %v4225_v29, %v4227_v62  ;;  %v1535_v58 = vpop.permute.xlu1 %1534  ;;  %v4240_v25 = vld [vmem:[#allocation32_spill] sm:$0xff] }
 0x607   : > { %v710_v33 = vadd.f32 %v701_v16, %v671_v19  ;;  %v790_v26 = vadd.f32 %v781_v5, %v751_v43  ;;  %v1500_v10 = vmul.f32 %v3502_v14, %v1496_v54  ;;  %v791_v48 = vadd.f32 %v3330_v11, %v752_v17  ;;  %v4233_v19 = vld [vmem:[#allocation29_spill] sm:$0xff]  ;;  %v4241_v17 = vld [vmem:[#allocation48_spill] sm:$0xff] }
 0x608   : > { %v1501_v27 = vmul.f32 %v3517_v3, %v1496_v54  ;;  %v858_v21 = vsel %vm855_vm12, %v4231_v55, %v4230_v6  ;;  %v859_v11 = vsel %vm855_vm12, %v4230_v6, %v4232_v31  ;;  %v1502_v52 = vmul.f32 %v1496_v54, %v3374_v8  ;;  %v4237_v54 = vld [vmem:[#allocation46_spill] sm:$0xff] }
 0x609   : > { %1434 = vrot.lane.b32.xlu0 %v1422_v15, %s2734_s10  ;;  %1436 = vrot.lane.b32.xlu1 %v1423_v9, %s2734_s10  ;;  %v749_v22 = vadd.f32 %v740_v23, %v710_v33  ;;  %v817_v15 = vsel %vm816_vm11, %v4224_v12, %v4223_v61  ;;  %v819_v9 = vsel %vm816_vm11, %v4226_v45, %v4225_v29  ;;  %vm1284_vm8 = vcmask 867328  }
 0x60a   : > { %v828_v53 = vadd.f32 %v819_v9, %v789_v51  ;;  %v829_v28 = vadd.f32 %v820_v0, %v790_v26  ;;  %v826_v39 = vadd.f32 %v817_v15, %v787_v47  ;;  %v818_v38 = vsel %vm816_vm11, %v4223_v61, %v4226_v45  ;;  %v4242_v26 = vld [vmem:[#allocation49_spill] sm:$0xff]  ;;  %v4243_v9 = vld [vmem:[#allocation75_spill] sm:$0xff] }
 0x60b   : > { %v895_v36 = vsel %vm894_vm13, %v4234_v57, %v4233_v19  ;;  %v897_v41 = vsel %vm894_vm13, %v4236_v35, %v4235_v37  ;;  %v898_v43 = vsel %vm894_vm13, %v4235_v37, %v4237_v54  ;;  %v936_v51 = vsel %vm933_vm14, %v4241_v17, %v4240_v25 }
 0x60c   : > { %v867_v30 = vadd.f32 %v858_v21, %v828_v53  ;;  %v868_v60 = vadd.f32 %v859_v11, %v829_v28  ;;  %v937_v23 = vsel %vm933_vm14, %v4240_v25, %v4242_v26  ;;  %v1540_v47 = vmul.f32 %v3517_v3, %v1535_v58  ;;  %v4245_v53 = vld [vmem:[#allocation50_spill] sm:$0xff]  ;;  %v4250_v11 = vld [vmem:[#allocation53_spill] sm:$0xff] }
 0x60d   : > { %1438 = vrot.lane.b32.xlu0 %v1424_v46, %s2734_s10  ;;  %1469 = vrot.lane.b32.xlu1 %v1459_v50, %s2735_s18  ;;  %v779_v50 = vsel %vm777_vm10, %v4221_v40, %v3328_v7  ;;  %v4228_v46 = vld [vmem:[#allocation27_spill] sm:$0xff]  ;;  %v1537_v7 = vmul.f32 %v3525_v24, %v1535_v58  ;;  %v896_v15 = vsel %vm894_vm13, %v4233_v19, %v4236_v35  ;;  %vm1323_vm9 = vcmask 859136   ;;  %s395_s10 = scalar_lea.vmem [#allocation9], %s2219_s30  ;;  %s2057_s30 = scalar_lea.sflag [#allocation5], %s3039_s15 }
 0x60e   : > { %v788_v34 = vadd.f32 %v779_v50, %v749_v22  ;;  %v856_v63 = vsel %vm855_vm12, %v4229_v32, %v4228_v46  ;;  %v906_v16 = vadd.f32 %v897_v41, %v867_v30  ;;  %v907_v13 = vadd.f32 %v898_v43, %v868_v60  ;;  %v4239_v40 = vld [vmem:[#allocation47_spill] sm:$0xff]  ;;  %v4252_v30 = vld [vmem:[#allocation54_spill] sm:$0xff]  ;;  %v4254_v43 = vld [vmem:[#allocation57_spill] sm:$0xff] }
 0x60f   : > { %v865_v2 = vadd.f32 %v856_v63, %v826_v39  ;;  %v857_v33 = vsel %vm855_vm12, %v4228_v46, %v4231_v55  ;;  %v1541_v29 = vmul.f32 %v1535_v58, %v3374_v8  ;;  %v4247_v50 = vld [vmem:[#allocation51_spill] sm:$0xff]  ;;  %v4248_v39 = vld [vmem:[#allocation52_spill] sm:$0xff]  ;;  %v1579_v35 = vmul.f32 %v3517_v3, %v4243_v9 }
 0x610   : > { %v945_v22 = vadd.f32 %v936_v51, %v906_v16  ;;  %v946_v61 = vadd.f32 %v937_v23, %v907_v13  ;;  %v4256_v13 = vld [vmem:[#allocation59_spill] sm:$0xff]  ;;  %v4258_v23 = vld [vmem:[#allocation65_spill] sm:$0xff]  ;;  %vm1362_vm10 = vcmask 850944   ;;  %vm1401_vm11 = vcmask 842752  }
 0x611   : > { %1471 = vrot.lane.b32.xlu0 %v1460_v20, %s2735_s18  ;;  %1473 = vrot.lane.b32.xlu1 %v1461_v49, %s2735_s18  ;;  %v830_v20 = vadd.f32 %v4227_v62, %v791_v48  ;;  %v827_v49 = vadd.f32 %v818_v38, %v788_v34  ;;  %v904_v42 = vadd.f32 %v895_v36, %v865_v2  ;;  %v4246_v48 = vld [vmem:[#allocation34_spill] sm:$0xff]  ;;  %vm1440_vm12 = vcmask 834560  }
 0x612   : > { %v1576_v62 = vmul.f32 %v3525_v24, %v4243_v9  ;;  %v976_v34 = vsel %vm972_vm15, %v4246_v48, %v4248_v39  ;;  %v1578_v2 = vmul.f32 %v3502_v14, %v4243_v9  ;;  %vm1479_vm13 = vcmask 826368  }
 0x613   : > { %v866_v5 = vadd.f32 %v857_v33, %v827_v49  ;;  %v985_v32 = vadd.f32 %v976_v34, %v946_v61  ;;  %v3711_v49 = vpop.permute.xlu1 %1612  ;;  %v1689_v33 = vld [vmem:[%s4065_s4] sm:$0xff]  ;;  %v4265_v34 = vld [vmem:[#allocation64_spill] sm:$0xff] }
 0x614   : > { %v1615_v51 = vmul.f32 %v3525_v24, %v3711_v49  ;;  %v4260_v61 = vld [vmem:[#allocation62_spill] sm:$0xff] }
 0x615   : > { %1475 = vrot.lane.b32.xlu0 %v1462_v18, %s2735_s18  ;;  %1477 = vrot.lane.b32.xlu1 %v1463_v4, %s2735_s18  ;;  %v1538_v18 = vmul.f32 %v3496_v1, %v1535_v58  ;;  %v869_v4 = vadd.f32 %v4232_v31, %v830_v20  ;;  %v905_v0 = vadd.f32 %v896_v15, %v866_v5  ;;  %v4249_v31 = vld [vmem:[#allocation35_spill] sm:$0xff] }
 0x616   : > { %v4253_v20 = vld [vmem:[#allocation55_spill] sm:$0xff]  ;;  %v1616_v15 = vmul.f32 %v3496_v1, %v3711_v49 }
 0x617   : > { %v908_v12 = vadd.f32 %v4237_v54, %v869_v4  ;;  %v1049_v4 = vsel %vm1046_vm2, %v4254_v43, %v4256_v13 }
 0x619   : > { %1508 = vrot.lane.b32.xlu0 %v1498_v59, %s2736_s20  ;;  %1510 = vrot.lane.b32.xlu1 %v1499_v56, %s2736_s20  ;;  %v1539_v59 = vmul.f32 %v3502_v14, %v1535_v58  ;;  %v4238_v56 = vld [vmem:[#allocation31_spill] sm:$0xff]  ;;  %v1577_v58 = vmul.f32 %v3496_v1, %v4243_v9  ;;  %v947_v63 = vadd.f32 %v4242_v26, %v908_v12 }
 0x61a   : > { %v934_v44 = vsel %vm933_vm14, %v4239_v40, %v4238_v56  ;;  %v935_v6 = vsel %vm933_vm14, %v4238_v56, %v4241_v17  ;;  %v1013_v40 = vsel %vm1011_vm0, %v4249_v31, %v4252_v30  ;;  %v3735_v17 = vpop.permute.xlu1 %1651  ;;  %v1092_v12 = vsel %vm1089_vm3, %v4258_v23, %v4260_v61 }
 0x61b   : > { %v943_v45 = vadd.f32 %v934_v44, %v904_v42  ;;  %v944_v21 = vadd.f32 %v935_v6, %v905_v0  ;;  %v986_v36 = vadd.f32 %v4248_v39, %v947_v63  ;;  %v4257_v44 = vld [vmem:[#allocation56_spill] sm:$0xff]  ;;  %v1617_v63 = vmul.f32 %v3502_v14, %v3711_v49 }
 0x61c   : > { %v4261_v0 = vld [vmem:[#allocation60_spill] sm:$0xff]  ;;  %vm1518_vm14 = vcmask 818176  }
 0x61d   : > { %1512 = vrot.lane.b32.xlu0 %v1500_v10, %s2736_s20  ;;  %1514 = vrot.lane.b32.xlu1 %v1501_v27, %s2736_s20  ;;  %v4244_v10 = vld [vmem:[#allocation33_spill] sm:$0xff]  ;;  %v975_v27 = vsel %vm972_vm15, %v4247_v50, %v4246_v48  ;;  %v1025_v56 = vadd.f32 %v4253_v20, %v986_v36 }
 0x61e   : > { %v973_v28 = vsel %vm972_vm15, %v4245_v53, %v4244_v10  ;;  %v984_v46 = vadd.f32 %v975_v27, %v945_v22  ;;  %v974_v37 = vsel %vm972_vm15, %v4244_v10, %v4247_v50  ;;  %v4263_v50 = vld [vmem:[#allocation68_spill] sm:$0xff]  ;;  %v4264_v27 = vld [vmem:[#allocation63_spill] sm:$0xff]  ;;  %vm1557_vm15 = vcmask 809984  }
 0x61f   : > { %v982_v55 = vadd.f32 %v973_v28, %v943_v45  ;;  %v983_v54 = vadd.f32 %v974_v37, %v944_v21  ;;  %v4262_v28 = vld [vmem:[#allocation66_spill] sm:$0xff]  ;;  %v1130_v39 = vsel %vm1128_vm4, %v4264_v27, %v4263_v50  ;;  %v4271_v37 = vld [vmem:[#allocation73_spill] sm:$0xff] }
 0x620   : > { %v1093_v48 = vsel %vm1089_vm3, %v4260_v61, %v4262_v28 }
 0x621   : > { %1516 = vrot.lane.b32.xlu0 %v1502_v52, %s2736_s20  ;;  %1547 = vrot.lane.b32.xlu1 %v1537_v7, %s2737_s21  ;;  %v1012_v7 = vsel %vm1011_vm0, %v4250_v11, %v4249_v31  ;;  %v4251_v52 = vld [vmem:[#allocation36_spill] sm:$0xff]  ;;  %v1022_v26 = vadd.f32 %v1013_v40, %v983_v54  ;;  %v4266_v31 = vmov 1  }
 0x622   : > { %v1014_v60 = vsel %vm1011_vm0, %v4252_v30, %v4251_v52  ;;  %v1015_v38 = vsel %vm1011_vm0, %v4251_v52, %v4253_v20  ;;  %v1021_v41 = vadd.f32 %v1012_v7, %v982_v55  ;;  %v4267_v7 = vld [vmem:[#allocation67_spill] sm:$0xff]  ;;  %vm1596_vm0 = vcmask 801792  }
 0x623   : > { %v1023_v19 = vadd.f32 %v1014_v60, %v984_v46  ;;  %v1024_v57 = vadd.f32 %v1015_v38, %v985_v32  ;;  %v1618_v60 = vmul.f32 %v3517_v3, %v3711_v49  ;;  %v4268_v38 = vld [vmem:[#allocation69_spill] sm:$0xff] }
 0x624   : > { %v1055_v25 = vadd.f32 %v4257_v44, %v1021_v41  ;;  %v1654_v41 = vmul.f32 %v3525_v24, %v3735_v17 }
 0x625   : > { %1549 = vrot.lane.b32.xlu0 %v1538_v18, %s2737_s21  ;;  %1551 = vrot.lane.b32.xlu1 %v1539_v59, %s2737_s21  ;;  %v4255_v18 = vld [vmem:[#allocation58_spill] sm:$0xff]  ;;  %v1580_v59 = vmul.f32 %v4243_v9, %v3374_v8  ;;  %v1058_v5 = vadd.f32 %v1049_v4, %v1024_v57  ;;  %v1059_v9 = vadd.f32 %v4256_v13, %v1025_v56  ;;  %v4270_v57 = vld [vmem:[#allocation71_spill] sm:$0xff] }
 0x626   : > { %v1048_v16 = vsel %vm1046_vm2, %v4255_v18, %v4254_v43  ;;  %v1099_v10 = vadd.f32 %v4261_v0, %v1055_v25  ;;  %v1619_v13 = vmul.f32 %v3711_v49, %v3374_v8  ;;  %v4273_v25 = vld [vmem:[#allocation74_spill] sm:$0xff] }
 0x627   : > { %v1057_v42 = vadd.f32 %v1048_v16, %v1023_v19  ;;  %v1102_v45 = vadd.f32 %v1092_v12, %v1058_v5  ;;  %v1103_v21 = vadd.f32 %v1093_v48, %v1059_v9  ;;  %v4269_v19 = vld [vmem:[#allocation72_spill] sm:$0xff]  ;;  %v1171_v49 = vsel %vm1167_vm6, %v4271_v37, %v4273_v25 }
 0x628   : > { %v1138_v52 = vadd.f32 %v4267_v7, %v1099_v10  ;;  %v1169_v36 = vsel %vm1167_vm6, %v4270_v57, %v4269_v19  ;;  %v1658_v48 = vmul.f32 %v3735_v17, %v3374_v8  ;;  %v4281_v25 = vmov 7  }
 0x629   : > { %1553 = vrot.lane.b32.xlu0 %v1540_v47, %s2737_s21  ;;  %1555 = vrot.lane.b32.xlu1 %v1541_v29, %s2737_s21  ;;  %v4259_v47 = vld [vmem:[#allocation61_spill] sm:$0xff]  ;;  %s2073_s21 = sshll.u32 %s395_s10, 4  ;;  %s3999_s21 = int_to_ptr.vmem [resolvable:$true] %s2073_s21 }
 0x62a   : > { %v1091_v22 = vsel %vm1089_vm3, %v4259_v47, %v4258_v23  ;;  %v1090_v11 = vsel %vm1089_vm3, %v4261_v0, %v4259_v47  ;;  %vm1635_vm3 = vcmask 793600   ;;  %p2552_p10 = scmp.lt.s32.totalorder %s3999_s21, %s2550_s12 }
 0x62b   : > { %v1101_v29 = vadd.f32 %v1091_v22, %v1057_v42  ;;  %v1655_v22 = vmul.f32 %v3496_v1, %v3735_v17  ;;  %v1657_v1 = vmul.f32 %v3517_v3, %v3735_v17 }
 0x62d   : > { %1586 = vrot.lane.b32.xlu0 %v1576_v62, %s2738_s17  ;;  %1588 = vrot.lane.b32.xlu1 %v1577_v58, %s2738_s17  ;;  %v1047_v62 = vsel %vm1046_vm2, %v4257_v44, %v4255_v18  ;;  %v1131_v58 = vsel %vm1128_vm4, %v4263_v50, %v4265_v34  ;;  %v1140_v6 = vadd.f32 %v1130_v39, %v1101_v29 }
 0x62e   : > { %v1056_v53 = vadd.f32 %v1047_v62, %v1022_v26  ;;  %v1141_v55 = vadd.f32 %v1131_v58, %v1102_v45  ;;  %v1656_v29 = vmul.f32 %v3502_v14, %v3735_v17 }
 0x62f   : > { %v1179_v43 = vadd.f32 %v1169_v36, %v1140_v6 }
 0x630   : > { %v1100_v20 = vadd.f32 %v1090_v11, %v1056_v53 }
 0x631   : > { %1590 = vrot.lane.b32.xlu0 %v1578_v2, %s2738_s17  ;;  %1592 = vrot.lane.b32.xlu1 %v1579_v35, %s2738_s17  ;;  %v1132_v2 = vsel %vm1128_vm4, %v4265_v34, %v4268_v38  ;;  %v1170_v35 = vsel %vm1167_vm6, %v4269_v19, %v4271_v37  ;;  %v4277_v38 = vmov 6   ;;  %v2000_v37 = vld [vmem:[%s3045_s19] sm:$0xff] }
 0x632   : > { %v1180_v18 = vadd.f32 %v1170_v35, %v1141_v55  ;;  %v1142_v4 = vadd.f32 %v1132_v2, %v1103_v21  ;;  %v4275_v21 = vmov 3   ;;  %v4278_v2 = vmov 4  }
 0x634   : > { %v1181_v23 = vadd.f32 %v1171_v49, %v1142_v4  ;;  %v4280_v4 = vmov 0  }
 0x635   : > { %1594 = vrot.lane.b32.xlu0 %v1580_v59, %s2738_s17  ;;  %1692 = vperm.xlu1 %2441, %v1689_v33   ;;  %v1129_v33 = vsel %vm1128_vm4, %v4267_v7, %v4264_v27  ;;  %v4272_v59 = vld [vmem:[#allocation70_spill] sm:$0xff]  ;;  %vm1674_vm4 = vcmask 785408  }
 0x636   : > { %v1177_v42 = vadd.f32 %v4272_v59, %v1138_v52  ;;  %v1139_v40 = vadd.f32 %v1129_v33, %v1100_v20  ;;  %v1168_v61 = vsel %vm1167_vm6, %v4272_v59, %v4270_v57  ;;  %v1715_v27 = vld [vmem:[%s4274_s23] sm:$0xff]  ;;  %s2551_s23 = scalar_lea.vmem %s2550_s12, 1024 }
 0x638   : > { %v1178_v45 = vadd.f32 %v1168_v61, %v1139_v40 }
 0x639   : > { %1625 = vrot.lane.b32.xlu0 %v1615_v51, %s2739_s24  ;;  %1627 = vrot.lane.b32.xlu1 %v1616_v15, %s2739_s24 }
 0x63a   : > { %2442 = vset.pattern.permute.xlu1 %v4266_v31  ;;  %v4276_v31 = vmov 2  }
 0x63b   : > { %v1199_v46 = vpop.permute.xlu1 %1198  ;;  %v1197_v32 = vpop.permute.xlu0 %1196 }
 0x63c   : > { %v1207_v30 = vsel %vm1206_vm5, %v1197_v32, %v1199_v46  ;;  %v1216_v51 = vadd.f32 %v1197_v32, %v1177_v42 }
 0x63d   : > { %1629 = vrot.lane.b32.xlu0 %v1617_v63, %s2739_s24  ;;  %1631 = vrot.lane.b32.xlu1 %v1618_v60, %s2739_s24  ;;  %v1217_v62 = vadd.f32 %v1207_v30, %v1178_v45  ;;  %v2001_v45 = vld [vmem:[%s3045_s19 + $0x8] sm:$0xff] }
 0x63f   : > { %v1203_v54 = vpop.permute.xlu1 %1202  ;;  %v1201_v16 = vpop.permute.xlu0 %1200 }
 0x640   : > { %v1208_v5 = vsel %vm1206_vm5, %v1199_v46, %v1201_v16  ;;  %v1209_v56 = vsel %vm1206_vm5, %v1201_v16, %v1203_v54 }
 0x641   : > { %v1218_v24 = vadd.f32 %v1208_v5, %v1179_v43  ;;  %v1219_v44 = vadd.f32 %v1209_v56, %v1180_v18  ;;  %1633 = vrot.lane.b32.xlu0 %v1619_v13, %s2739_s24  ;;  %1664 = vrot.lane.b32.xlu1 %v1654_v41, %s2740_s5  ;;  %v4279_v18 = vmov 5   ;;  %v2002_v13 = vld [vmem:[%s3045_s19 + $0x10] sm:$0xff] }
 0x643   : > { %v1236_v26 = vpop.permute.xlu1 %1235  ;;  %v1205_v47 = vpop.permute.xlu0 %1204 }
 0x644   : > { %v1255_v12 = vadd.f32 %v1236_v26, %v1216_v51  ;;  %v1210_v15 = vsel %vm1206_vm5, %v1203_v54, %v1205_v47  ;;  %v1989_v47 = vld [vmem:[%s4282_s1] sm:$0xff] }
 0x645   : > { %v1220_v9 = vadd.f32 %v1210_v15, %v1181_v23  ;;  %1666 = vrot.lane.b32.xlu0 %v1655_v22, %s2740_s5  ;;  %1668 = vrot.lane.b32.xlu1 %v1656_v29, %s2740_s5 }
 0x647   : > { %v1240_v0 = vpop.permute.xlu1 %1239  ;;  %v1238_v10 = vpop.permute.xlu0 %1237 }
 0x648   : > { %v1246_v53 = vsel %vm1245_vm7, %v1236_v26, %v1238_v10  ;;  %v1247_v28 = vsel %vm1245_vm7, %v1238_v10, %v1240_v0 }
 0x649   : > { %v1256_v50 = vadd.f32 %v1246_v53, %v1217_v62  ;;  %v1257_v14 = vadd.f32 %v1247_v28, %v1218_v24  ;;  %1670 = vrot.lane.b32.xlu0 %v1657_v1, %s2740_s5  ;;  %1672 = vrot.lane.b32.xlu1 %v1658_v48, %s2740_s5  ;;  %v2003_v28 = vld [vmem:[%s3045_s19 + $0x18] sm:$0xff]  ;;  %s4283_s19 = sld [smem:[#allocation17_spill]]  ;;  %s2545_s5 = scalar_lea.vmem %s3999_s21, 512 }
 0x64a   : > { %p2546_p4 = scmp.ne.s32.totalorder %s3999_s21, %s2545_s5  ;;  %p2553_p2 = scmp.lt.s32.totalorder %s2551_s23, %s2545_s5 }
 0x64b   : > { %v1244_v39 = vpop.permute.xlu1 %1243  ;;  %v1242_v34 = vpop.permute.xlu0 %1241 }
 0x64c   : > { %v1248_v58 = vsel %vm1245_vm7, %v1240_v0, %v1242_v34  ;;  %v1249_v3 = vsel %vm1245_vm7, %v1242_v34, %v1244_v39  ;;  %p2547_p5 = pnand %p2546_p4, %p4286_p13  ;;  %p2554_p7 = por %p2553_p2, %p2552_p10 }
 0x64d   : > { %v1258_v46 = vadd.f32 %v1248_v58, %v1219_v44  ;;  %v1259_v32 = vadd.f32 %v1249_v3, %v1220_v9  ;;  %1718 = vperm.xlu0 %2438, %v1715_v27   ;;  %1752 = vperm.xlu1 %2442, %v1715_v27  }
 0x64e   : > { %p2548_p6 = pneg %p2547_p5 }
 0x64f   : > { %v1277_v8 = vpop.permute.xlu1 %1276  ;;  %v1275_v17 = vpop.permute.xlu0 %1274  ;;  %s2229_s8 = smul.u32 12, %s4283_s19 }
 0x650   : > { %v1285_v63 = vsel %vm1284_vm8, %v1275_v17, %v1277_v8  ;;  %v1294_v6 = vadd.f32 %v1275_v17, %v1255_v12  ;;  %p2555_p1 = pnand %p2554_p7, %p2548_p6 }
 0x651   : > { %v1295_v55 = vadd.f32 %v1285_v63, %v1256_v50  ;;  %2444 = vset.pattern.permute.xlu0 %v4275_v21  ;;  %2443 = vset.pattern.permute.xlu1 %v4276_v31 }
 0x652   : > { %1820 = vperm.xlu0 %2444, %v1715_v27   ;;  %1786 = vperm.xlu1 %2443, %v1715_v27  }
 0x653   : > { %v1279_v11 = vpop.permute.xlu0 %1278  ;;  %v1281_v7 = vpop.permute.xlu1 %1280 }
 0x654   : > { %v1286_v52 = vsel %vm1284_vm8, %v1277_v8, %v1279_v11  ;;  %v1287_v30 = vsel %vm1284_vm8, %v1279_v11, %v1281_v7 }
 0x655   : > { %v1296_v60 = vadd.f32 %v1286_v52, %v1257_v14  ;;  %v1297_v20 = vadd.f32 %v1287_v30, %v1258_v46 }
 0x656   : > { %2447 = vset.pattern.permute.xlu0 %v4277_v38  ;;  %2445 = vset.pattern.permute.xlu1 %v4278_v2 }
 0x657   : > { %1922 = vperm.xlu0 %2447, %v1715_v27   ;;  %v1283_v19 = vpop.permute.xlu0 %1282  ;;  %v1314_v57 = vpop.permute.xlu1 %1313  ;;  %1854 = vperm.xlu1 %2445, %v1715_v27  }
 0x658   : > { %v1288_v36 = vsel %vm1284_vm8, %v1281_v7, %v1283_v19  ;;  %v1333_v35 = vadd.f32 %v1314_v57, %v1294_v6 }
 0x659   : > { %v1298_v41 = vadd.f32 %v1288_v36, %v1259_v32 }
 0x65b   : > { %v1316_v54 = vpop.permute.xlu0 %1315  ;;  %2008 = vrot.lane.b32.xlu0 %v2000_v37, %s2677_s9  ;;  %v1318_v43 = vpop.permute.xlu1 %1317  ;;  %2446 = vset.pattern.permute.xlu1 %v4279_v18 }
 0x65c   : > { %v1324_v16 = vsel %vm1323_vm9, %v1314_v57, %v1316_v54  ;;  %2450 = vset.pattern.permute.xlu0 %v4280_v4  ;;  %v1325_v33 = vsel %vm1323_vm9, %v1316_v54, %v1318_v43  ;;  %1888 = vperm.xlu1 %2446, %v1715_v27  }
 0x65d   : > { %v1334_v59 = vadd.f32 %v1324_v16, %v1295_v55  ;;  %v1335_v42 = vadd.f32 %v1325_v33, %v1296_v60 }
 0x65f   : > { %v1320_v5 = vpop.permute.xlu0 %1319  ;;  %2012 = vrot.lane.b32.xlu0 %v2002_v13, %s2677_s9  ;;  %v1322_v56 = vpop.permute.xlu1 %1321 }
 0x660   : > { %v1326_v40 = vsel %vm1323_vm9, %v1318_v43, %v1320_v5  ;;  %v1327_v24 = vsel %vm1323_vm9, %v1320_v5, %v1322_v56  ;;  %2448 = vset.pattern.permute.xlu1 %v4281_v25 }
 0x661   : > { %v1336_v44 = vadd.f32 %v1326_v40, %v1297_v20  ;;  %v1337_v49 = vadd.f32 %v1327_v24, %v1298_v41  ;;  %1956 = vperm.xlu1 %2448, %v1715_v27   ;;  %v1721_v24 = vlaneseq }
 0x663   : > { %v1353_v51 = vpop.permute.xlu0 %1352  ;;  %v1355_v26 = vpop.permute.xlu1 %1354 }
 0x664   : > { %v1372_v23 = vadd.f32 %v1353_v51, %v1333_v35  ;;  %v1363_v22 = vsel %vm1362_vm10, %v1353_v51, %v1355_v26 }
 0x665   : > { %v1373_v61 = vadd.f32 %v1363_v22, %v1334_v59  ;;  %2449 = vset.pattern.permute.xlu1 %v4280_v4 }
 0x666   : > { %1992 = vperm.xlu1 %2449, %v1989_v47  }
 0x667   : > { %v1357_v12 = vpop.permute.xlu0 %1356  ;;  %v1359_v15 = vpop.permute.xlu1 %1358 }
 0x668   : > { %v1364_v29 = vsel %vm1362_vm10, %v1355_v26, %v1357_v12  ;;  %v1365_v9 = vsel %vm1362_vm10, %v1357_v12, %v1359_v15 }
 0x669   : > { %v1374_v62 = vadd.f32 %v1364_v29, %v1335_v42  ;;  %v1375_v0 = vadd.f32 %v1365_v9, %v1336_v44 }
 0x66a   : > { %2010 = vrot.lane.b32.xlu1 %v2001_v45, %s2677_s9 }
 0x66b   : > { %v1361_v10 = vpop.permute.xlu0 %1360  ;;  %v1392_v1 = vpop.permute.xlu1 %1391 }
 0x66c   : > { %v1366_v53 = vsel %vm1362_vm10, %v1359_v15, %v1361_v10  ;;  %v1411_v48 = vadd.f32 %v1392_v1, %v1372_v23 }
 0x66d   : > { %v1376_v50 = vadd.f32 %v1366_v53, %v1337_v49 }
 0x66e   : > { %2014 = vrot.lane.b32.xlu1 %v2003_v28, %s2677_s9  ;;  %s4284_s9 = sld [smem:[#allocation16_spill]] }
 0x66f   : > { %v1394_v14 = vpop.permute.xlu0 %1393  ;;  %v1396_v27 = vpop.permute.xlu1 %1395 }
 0x670   : > { %v1402_v39 = vsel %vm1401_vm11, %v1392_v1, %v1394_v14  ;;  %v1403_v34 = vsel %vm1401_vm11, %v1394_v14, %v1396_v27 }
 0x671   : > { %v1412_v58 = vadd.f32 %v1402_v39, %v1373_v61  ;;  %v1413_v3 = vadd.f32 %v1403_v34, %v1374_v62 }
 0x673   : > { %v1398_v46 = vpop.permute.xlu0 %1397  ;;  %v1400_v32 = vpop.permute.xlu1 %1399 }
 0x674   : > { %v1404_v8 = vsel %vm1401_vm11, %v1396_v27, %v1398_v46  ;;  %v1405_v17 = vsel %vm1401_vm11, %v1398_v46, %v1400_v32  ;;  %s2224_s29 = sshll.u32 %s4284_s9, 2 }
 0x675   : > { %v1414_v63 = vadd.f32 %v1404_v8, %v1375_v0  ;;  %v1415_v6 = vadd.f32 %v1405_v17, %v1376_v50  ;;  %v3856_v0 = vshrl.u32 %v1721_v24, 7  ;;  %s2069_s18 = sadd.s32 %s2229_s8, %s2224_s29 }
 0x676   : > { %s2225_s20 = sshll.u32 %s2069_s18, 7 }
 0x677   : > { %v1431_v55 = vpop.permute.xlu0 %1430  ;;  %v1433_v21 = vpop.permute.xlu1 %1432  ;;  %s3997_s24 = scalar_lea.hbm %s4285_s13, %s2225_s20 }
 0x678   : > { %v1441_v56 = vsel %vm1440_vm12, %v1431_v55, %v1433_v21  ;;  %v1450_v44 = vadd.f32 %v1431_v55, %v1411_v48 }
 0x679   : > { %v1451_v26 = vadd.f32 %v1441_v56, %v1412_v58 }
 0x67b   : > { %v1435_v31 = vpop.permute.xlu0 %1434  ;;  %v1437_v11 = vpop.permute.xlu1 %1436 }
 0x67c   : > { %v1442_v25 = vsel %vm1440_vm12, %v1433_v21, %v1435_v31  ;;  %v1443_v49 = vsel %vm1440_vm12, %v1435_v31, %v1437_v11 }
 0x67d   : > { %v1452_v15 = vadd.f32 %v1442_v25, %v1413_v3  ;;  %v1453_v29 = vadd.f32 %v1443_v49, %v1414_v63 }
 0x67f   : > { %v1439_v7 = vpop.permute.xlu0 %1438  ;;  %v1470_v52 = vpop.permute.xlu1 %1469 }
 0x680   : > { %v1444_v23 = vsel %vm1440_vm12, %v1437_v11, %v1439_v7  ;;  %v1489_v47 = vadd.f32 %v1470_v52, %v1450_v44 }
 0x681   : > { %v1454_v48 = vadd.f32 %v1444_v23, %v1415_v6 }
 0x683   : > { %v1472_v30 = vpop.permute.xlu0 %1471  ;;  %v1474_v60 = vpop.permute.xlu1 %1473 }
 0x684   : > { %v1480_v51 = vsel %vm1479_vm13, %v1470_v52, %v1472_v30  ;;  %v1481_v22 = vsel %vm1479_vm13, %v1472_v30, %v1474_v60 }
 0x685   : > { %v1490_v45 = vadd.f32 %v1480_v51, %v1451_v26  ;;  %v1491_v50 = vadd.f32 %v1481_v22, %v1452_v15 }
 0x687   : > { %v1476_v20 = vpop.permute.xlu0 %1475  ;;  %v1478_v38 = vpop.permute.xlu1 %1477 }
 0x688   : > { %v1482_v61 = vsel %vm1479_vm13, %v1474_v60, %v1476_v20  ;;  %v1483_v10 = vsel %vm1479_vm13, %v1476_v20, %v1478_v38  ;;  %v3869_v60 = vsub.s32 1, %v3856_v0 }
 0x689   : > { %v1492_v14 = vadd.f32 %v1482_v61, %v1453_v29  ;;  %v1493_v46 = vadd.f32 %v1483_v10, %v1454_v48  ;;  %v3895_v10 = vsub.s32 4, %v3856_v0 }
 0x68b   : > { %v1509_v2 = vpop.permute.xlu0 %1508  ;;  %v1511_v19 = vpop.permute.xlu1 %1510 }
 0x68c   : > { %v1519_v12 = vsel %vm1518_vm14, %v1509_v2, %v1511_v19  ;;  %v1528_v1 = vadd.f32 %v1509_v2, %v1489_v47 }
 0x68d   : > { %v1529_v27 = vadd.f32 %v1519_v12, %v1490_v45 }
 0x68f   : > { %v1513_v57 = vpop.permute.xlu0 %1512  ;;  %v1515_v36 = vpop.permute.xlu1 %1514 }
 0x690   : > { %v1520_v53 = vsel %vm1518_vm14, %v1511_v19, %v1513_v57  ;;  %v1521_v39 = vsel %vm1518_vm14, %v1513_v57, %v1515_v36 }
 0x691   : > { %v1530_v32 = vadd.f32 %v1520_v53, %v1491_v50  ;;  %v1531_v11 = vadd.f32 %v1521_v39, %v1492_v14 }
 0x693   : > { %v1517_v37 = vpop.permute.xlu0 %1516  ;;  %v1548_v41 = vpop.permute.xlu1 %1547 }
 0x694   : > { %v1567_v34 = vadd.f32 %v1548_v41, %v1528_v1  ;;  %v1522_v58 = vsel %vm1518_vm14, %v1515_v36, %v1517_v37 }
 0x695   : > { %v1532_v7 = vadd.f32 %v1522_v58, %v1493_v46 }
 0x697   : > { %v1550_v35 = vpop.permute.xlu0 %1549  ;;  %v1552_v43 = vpop.permute.xlu1 %1551 }
 0x698   : > { %v1558_v28 = vsel %vm1557_vm15, %v1548_v41, %v1550_v35  ;;  %v1559_v8 = vsel %vm1557_vm15, %v1550_v35, %v1552_v43 }
 0x699   : > { %v1568_v17 = vadd.f32 %v1558_v28, %v1529_v27  ;;  %v1569_v20 = vadd.f32 %v1559_v8, %v1530_v32 }
 0x69b   : > { %v1554_v54 = vpop.permute.xlu0 %1553  ;;  %v1556_v13 = vpop.permute.xlu1 %1555 }
 0x69c   : > { %v1560_v55 = vsel %vm1557_vm15, %v1552_v43, %v1554_v54  ;;  %v1561_v6 = vsel %vm1557_vm15, %v1554_v54, %v1556_v13 }
 0x69d   : > { %v1570_v57 = vadd.f32 %v1560_v55, %v1531_v11  ;;  %v1571_v36 = vadd.f32 %v1561_v6, %v1532_v7 }
 0x69f   : > { %v1587_v18 = vpop.permute.xlu0 %1586  ;;  %v1589_v33 = vpop.permute.xlu1 %1588 }
 0x6a0   : > { %v1597_v3 = vsel %vm1596_vm0, %v1587_v18, %v1589_v33  ;;  %v1606_v21 = vadd.f32 %v1587_v18, %v1567_v34 }
 0x6a1   : > { %v1607_v52 = vadd.f32 %v1597_v3, %v1568_v17 }
 0x6a3   : > { %v1591_v16 = vpop.permute.xlu0 %1590  ;;  %v1593_v42 = vpop.permute.xlu1 %1592 }
 0x6a4   : > { %v1598_v38 = vsel %vm1596_vm0, %v1589_v33, %v1591_v16  ;;  %v1599_v2 = vsel %vm1596_vm0, %v1591_v16, %v1593_v42  ;;  %v3879_v16 = vsub.s32 0, %v3856_v0 }
 0x6a5   : > { %v1608_v56 = vadd.f32 %v1598_v38, %v1569_v20  ;;  %v1609_v24 = vadd.f32 %v1599_v2, %v1570_v57 }
 0x6a7   : > { %v3848_v4 = vpop.permute.xlu0 %1594 }
 0x6a8   : > { %v1600_v37 = vsel %vm1596_vm0, %v1593_v42, %v3848_v4  ;;  %v3883_v4 = vsub.s32 2, %v3856_v0  ;;  %v3886_v42 = vsub.s32 3, %v3856_v0 }
 0x6ab   : > { %v1626_v59 = vpop.permute.xlu0 %1625 }
 0x6ac   : > { %v1645_v19 = vadd.f32 %v1626_v59, %v1606_v21 }
 0x6af   : > { %v1630_v5 = vpop.permute.xlu0 %1629 }
 0x6b3   : > { %v1634_v9 = vpop.permute.xlu0 %1633 }
 0x6b4   : > { %v3850_v40 = vpop.permute.xlu1 %1692 }
 0x6b7   : > { %v1667_v30 = vpop.permute.xlu0 %1666 }
 0x6b8   : > { %v1628_v62 = vpop.permute.xlu1 %1627 }
 0x6b9   : > { %v1636_v31 = vsel %vm1635_vm3, %v1626_v59, %v1628_v62  ;;  %v1637_v54 = vsel %vm1635_vm3, %v1628_v62, %v1630_v5  ;;  %v1610_v59 = vadd.f32 %v1600_v37, %v1571_v36 }
 0x6ba   : > { %v1646_v35 = vadd.f32 %v1636_v31, %v1607_v52  ;;  %v1647_v25 = vadd.f32 %v1637_v54, %v1608_v56 }
 0x6bc   : > { %v1632_v63 = vpop.permute.xlu1 %1631 }
 0x6bd   : > { %v1638_v43 = vsel %vm1635_vm3, %v1630_v5, %v1632_v63  ;;  %v1671_v5 = vpop.permute.xlu0 %1670  ;;  %v1639_v49 = vsel %vm1635_vm3, %v1632_v63, %v1634_v9  ;;  %v3898_v9 = vsub.s32 6, %v3856_v0 }
 0x6be   : > { %v1648_v51 = vadd.f32 %v1638_v43, %v1609_v24  ;;  %v1649_v45 = vadd.f32 %v1639_v49, %v1610_v59 }
 0x6c0   : > { %v1665_v41 = vpop.permute.xlu1 %1664 }
 0x6c1   : > { %v1675_v18 = vsel %vm1674_vm4, %v1665_v41, %v1667_v30  ;;  %v1684_v13 = vadd.f32 %v1665_v41, %v1645_v19 }
 0x6c2   : > { %v1685_v33 = vadd.f32 %v1675_v18, %v1646_v35 }
 0x6c3   : > { %v1695_v44 = vadd.f32 %v3850_v40, %v1684_v13 }
 0x6c4   : > { %v1696_v26 = vadd.f32 %v3850_v40, %v1685_v33  ;;  %v1669_v23 = vpop.permute.xlu1 %1668 }
 0x6c5   : > { %vm1700_vm5 = vcmp.ge.f32.partialorder %v1695_v44, 0.0  ;;  %v1705_v47 = vmul.f32 0.01, %v1695_v44  ;;  %v1676_v22 = vsel %vm1674_vm4, %v1667_v30, %v1669_v23  ;;  %v1677_v61 = vsel %vm1674_vm4, %v1669_v23, %v1671_v5 }
 0x6c6   : > { %vm1701_vm6 = vcmp.ge.f32.partialorder %v1696_v26, 0.0  ;;  %v1706_v12 = vmul.f32 0.01, %v1696_v26  ;;  %v1686_v15 = vadd.f32 %v1676_v22, %v1647_v25  ;;  %v1687_v29 = vadd.f32 %v1677_v61, %v1648_v51 }
 0x6c7   : > { %v3892_v62 = vsel %vm1700_vm5, %v1695_v44, %v1705_v47 }
 0x6c8   : > { %v3900_v1 = vsel %vm1701_vm6, %v1696_v26, %v1706_v12  ;;  %v1697_v53 = vadd.f32 %v3850_v40, %v1686_v15  ;;  %v1698_v28 = vadd.f32 %v3850_v40, %v1687_v29  ;;  %v1673_v48 = vpop.permute.xlu1 %1672  ;;  %v1758_v50 = vrot.slane %v3892_v62, %v3869_v60 }
 0x6c9   : > { %v1678_v14 = vsel %vm1674_vm4, %v1671_v5, %v1673_v48  ;;  %v1762_v27 = vrot.slane %v3900_v1, %v3869_v60  ;;  %v1724_v39 = vrot.slane %v3892_v62, %v3879_v16  ;;  %v1728_v34 = vrot.slane %v3900_v1, %v3879_v16 }
 0x6ca   : > { %vm1702_vm7 = vcmp.ge.f32.partialorder %v1697_v53, 0.0  ;;  %vm1703_vm8 = vcmp.ge.f32.partialorder %v1698_v28, 0.0  ;;  %v1707_v58 = vmul.f32 0.01, %v1697_v53  ;;  %v1708_v3 = vmul.f32 0.01, %v1698_v28 }
 0x6cb   : > { %v1688_v46 = vadd.f32 %v1678_v14, %v1649_v45  ;;  %v1792_v8 = vrot.slane %v3892_v62, %v3883_v4  ;;  %v1796_v17 = vrot.slane %v3900_v1, %v3883_v4  ;;  %v1826_v63 = vrot.slane %v3892_v62, %v3886_v42 }
 0x6cc   : > { %v1719_v32 = vpop.permute.xlu0 %1718  ;;  %v3919_v55 = vsel %vm1702_vm7, %v1697_v53, %v1707_v58  ;;  %v3921_v6 = vsel %vm1703_vm8, %v1698_v28, %v1708_v3  ;;  %v1753_v21 = vpop.permute.xlu1 %1752  ;;  %v1830_v24 = vrot.slane %v3900_v1, %v3886_v42 }
 0x6cd   : > { %v1741_v31 = vmul.f32 %v1724_v39, %v1719_v32  ;;  %v1742_v11 = vmul.f32 %v1728_v34, %v1719_v32  ;;  %v1699_v7 = vadd.f32 %v3850_v40, %v1688_v46  ;;  %v1766_v52 = vrot.slane %v3919_v55, %v3869_v60 }
 0x6ce   : > { %v1770_v30 = vrot.slane %v3921_v6, %v3869_v60  ;;  %v1775_v20 = vmul.f32 %v1758_v50, %v1753_v21  ;;  %v1776_v38 = vmul.f32 %v1762_v27, %v1753_v21  ;;  %v1732_v2 = vrot.slane %v3919_v55, %v3879_v16 }
 0x6cf   : > { %v1736_v19 = vrot.slane %v3921_v6, %v3879_v16  ;;  %v1800_v57 = vrot.slane %v3919_v55, %v3883_v4  ;;  %vm1704_vm9 = vcmp.ge.f32.partialorder %v1699_v7, 0.0  ;;  %v1709_v36 = vmul.f32 0.01, %v1699_v7 }
 0x6d0   : > { %v1777_v40 = vmul.f32 %v1766_v52, %v1753_v21  ;;  %v1778_v37 = vmul.f32 %v1770_v30, %v1753_v21  ;;  %v1743_v35 = vmul.f32 %v1732_v2, %v1719_v32  ;;  %v1780_v54 = vadd.f32 %v1775_v20, %v1741_v31 }
 0x6d1   : > { %v1744_v41 = vmul.f32 %v1736_v19, %v1719_v32  ;;  %v1781_v43 = vadd.f32 %v1776_v38, %v1742_v11  ;;  %v3934_v18 = vsel %vm1704_vm9, %v1699_v7, %v1709_v36  ;;  %v1787_v13 = vpop.permute.xlu1 %1786  ;;  %v1804_v56 = vrot.slane %v3921_v6, %v3883_v4  ;;  %v1821_v47 = vpop.permute.xlu0 %1820 }
 0x6d2   : > { %v1834_v33 = vrot.slane %v3919_v55, %v3886_v42  ;;  %v1774_v59 = vrot.slane %v3934_v18, %v3869_v60  ;;  %v1740_v44 = vrot.slane %v3934_v18, %v3879_v16  ;;  %v1782_v25 = vadd.f32 %v1777_v40, %v1743_v35 }
 0x6d3   : > { %v1783_v5 = vadd.f32 %v1778_v37, %v1744_v41  ;;  %v1808_v49 = vrot.slane %v3934_v18, %v3883_v4  ;;  %v1809_v51 = vmul.f32 %v1792_v8, %v1787_v13  ;;  %v1810_v26 = vmul.f32 %v1796_v17, %v1787_v13 }
 0x6d4   : > { %v1811_v23 = vmul.f32 %v1800_v57, %v1787_v13  ;;  %v1779_v22 = vmul.f32 %v1774_v59, %v1753_v21  ;;  %v1745_v61 = vmul.f32 %v1740_v44, %v1719_v32  ;;  %v1812_v12 = vmul.f32 %v1804_v56, %v1787_v13 }
 0x6d5   : > { %v1838_v15 = vrot.slane %v3921_v6, %v3886_v42  ;;  %v1813_v29 = vmul.f32 %v1808_v49, %v1787_v13  ;;  %v1814_v60 = vadd.f32 %v1809_v51, %v1780_v54  ;;  %v1815_v45 = vadd.f32 %v1810_v26, %v1781_v43 }
 0x6d6   : > { %v1816_v53 = vadd.f32 %v1811_v23, %v1782_v25  ;;  %v1784_v16 = vadd.f32 %v1779_v22, %v1745_v61  ;;  %v1817_v28 = vadd.f32 %v1812_v12, %v1783_v5  ;;  %v1842_v48 = vrot.slane %v3934_v18, %v3886_v42  ;;  %v1855_v50 = vpop.permute.xlu1 %1854  ;;  %v1923_v36 = vpop.permute.xlu0 %1922 }
 0x6d7   : > { %v1843_v4 = vmul.f32 %v1826_v63, %v1821_v47  ;;  %v1844_v14 = vmul.f32 %v1830_v24, %v1821_v47  ;;  %v1845_v27 = vmul.f32 %v1834_v33, %v1821_v47  ;;  %v1846_v39 = vmul.f32 %v1838_v15, %v1821_v47 }
 0x6d8   : > { %v1860_v34 = vrot.slane %v3892_v62, %v3895_v10  ;;  %v1818_v58 = vadd.f32 %v1813_v29, %v1784_v16  ;;  %v1847_v3 = vmul.f32 %v1842_v48, %v1821_v47  ;;  %v1864_v32 = vrot.slane %v3900_v1, %v3895_v10 }
 0x6d9   : > { %v1848_v46 = vadd.f32 %v1843_v4, %v1814_v60  ;;  %v1849_v8 = vadd.f32 %v1844_v14, %v1815_v45  ;;  %v1850_v17 = vadd.f32 %v1845_v27, %v1816_v53  ;;  %v1851_v21 = vadd.f32 %v1846_v39, %v1817_v28 }
 0x6da   : > { %v1868_v42 = vrot.slane %v3919_v55, %v3895_v10  ;;  %v1852_v63 = vadd.f32 %v1847_v3, %v1818_v58  ;;  %v1872_v31 = vrot.slane %v3921_v6, %v3895_v10  ;;  %v1876_v11 = vrot.slane %v3934_v18, %v3895_v10  ;;  %v2009_v60 = vpop.permute.xlu0 %2008 }
 0x6db   : > { %v1877_v7 = vmul.f32 %v1860_v34, %v1855_v50  ;;  %v1878_v52 = vmul.f32 %v1864_v32, %v1855_v50  ;;  %v1893_v20 = vsub.s32 5, %v3856_v0  ;;  %v1889_v38 = vpop.permute.xlu1 %1888  ;;  %v1928_v57 = vrot.slane %v3892_v62, %v3898_v9 }
 0x6dc   : > { %v1879_v30 = vmul.f32 %v1868_v42, %v1855_v50  ;;  %v1880_v2 = vmul.f32 %v1872_v31, %v1855_v50  ;;  %v1881_v19 = vmul.f32 %v1876_v11, %v1855_v50  ;;  %v1961_v40 = vsub.s32 7, %v3856_v0 }
 0x6dd   : > { %v1882_v37 = vadd.f32 %v1877_v7, %v1848_v46  ;;  %v1883_v35 = vadd.f32 %v1878_v52, %v1849_v8  ;;  %v1932_v41 = vrot.slane %v3900_v1, %v3898_v9  ;;  %v1936_v10 = vrot.slane %v3919_v55, %v3898_v9 }
 0x6de   : > { %v1884_v54 = vadd.f32 %v1879_v30, %v1850_v17  ;;  %v1885_v43 = vadd.f32 %v1880_v2, %v1851_v21  ;;  %v1886_v13 = vadd.f32 %v1881_v19, %v1852_v63  ;;  %v1940_v56 = vrot.slane %v3921_v6, %v3898_v9  ;;  %v2013_v42 = vpop.permute.xlu0 %2012 }
 0x6df   : > { %v1945_v24 = vmul.f32 %v1928_v57, %v1923_v36  ;;  %v1946_v33 = vmul.f32 %v1932_v41, %v1923_v36  ;;  %v1947_v59 = vmul.f32 %v1936_v10, %v1923_v36  ;;  %v1894_v44 = vrot.slane %v3892_v62, %v1893_v20 }
 0x6e0   : > { %v1898_v0 = vrot.slane %v3900_v1, %v1893_v20  ;;  %v1902_v25 = vrot.slane %v3919_v55, %v1893_v20  ;;  %v1906_v5 = vrot.slane %v3921_v6, %v1893_v20  ;;  %v1910_v49 = vrot.slane %v3934_v18, %v1893_v20  ;;  %v1957_v51 = vpop.permute.xlu1 %1956 }
 0x6e1   : > { %v1948_v26 = vmul.f32 %v1940_v56, %v1923_v36  ;;  %v1911_v23 = vmul.f32 %v1894_v44, %v1889_v38  ;;  %v1966_v47 = vrot.slane %v3900_v1, %v1961_v40  ;;  %v1970_v22 = vrot.slane %v3919_v55, %v1961_v40 }
 0x6e2   : > { %v1912_v61 = vmul.f32 %v1898_v0, %v1889_v38  ;;  %v1913_v12 = vmul.f32 %v1902_v25, %v1889_v38  ;;  %v1914_v15 = vmul.f32 %v1906_v5, %v1889_v38  ;;  %v1915_v29 = vmul.f32 %v1910_v49, %v1889_v38 }
 0x6e3   : > { %v1974_v45 = vrot.slane %v3921_v6, %v1961_v40  ;;  %v1980_v53 = vmul.f32 %v1966_v47, %v1957_v51  ;;  %v1981_v16 = vmul.f32 %v1970_v22, %v1957_v51  ;;  %v1916_v28 = vadd.f32 %v1911_v23, %v1882_v37 }
 0x6e4   : > { %v1917_v48 = vadd.f32 %v1912_v61, %v1883_v35  ;;  %v1918_v4 = vadd.f32 %v1913_v12, %v1884_v54  ;;  %v1919_v50 = vadd.f32 %v1914_v15, %v1885_v43  ;;  %v1962_v14 = vrot.slane %v3892_v62, %v1961_v40 }
 0x6e5   : > { %v1944_v1 = vrot.slane %v3934_v18, %v3898_v9  ;;  %v1982_v27 = vmul.f32 %v1974_v45, %v1957_v51  ;;  %v1993_v55 = vpop.permute.xlu1 %1992  ;;  %v1950_v39 = vadd.f32 %v1945_v24, %v1916_v28  ;;  %v1920_v34 = vadd.f32 %v1915_v29, %v1886_v13 }
 0x6e6   : > { %v1979_v58 = vmul.f32 %v1962_v14, %v1957_v51  ;;  %v1951_v3 = vadd.f32 %v1946_v33, %v1917_v48  ;;  %v1952_v46 = vadd.f32 %v1947_v59, %v1918_v4  ;;  %v1953_v32 = vadd.f32 %v1948_v26, %v1919_v50 }
 0x6e7   : > { %v1949_v6 = vmul.f32 %v1944_v1, %v1923_v36  ;;  %v1978_v63 = vrot.slane %v3934_v18, %v1961_v40 }
 0x6e8   : > { %v1984_v8 = vadd.f32 %v1979_v58, %v1950_v39  ;;  %v1985_v17 = vadd.f32 %v1980_v53, %v1951_v3  ;;  %v1986_v21 = vadd.f32 %v1981_v16, %v1952_v46  ;;  %v1987_v11 = vadd.f32 %v1982_v27, %v1953_v32 }
 0x6e9   : > { %v2011_v31 = vpop.permute.xlu1 %2010  ;;  %v1954_v62 = vadd.f32 %v1949_v6, %v1920_v34  ;;  %v1983_v30 = vmul.f32 %v1978_v63, %v1957_v51 }
 0x6ea   : > { %v1995_v7 = vadd.f32 %v1993_v55, %v1984_v8  ;;  %v1996_v9 = vadd.f32 %v1993_v55, %v1985_v17  ;;  %v2016_v52 = vsel %vm1046_vm2, %v2009_v60, %v2011_v31  ;;  %v2017_v20 = vsel %vm1046_vm2, %v2011_v31, %v2013_v42 }
 0x6eb   : > { %v1997_v19 = vadd.f32 %v1993_v55, %v1986_v21  ;;  %v1998_v36 = vadd.f32 %v1993_v55, %v1987_v11  ;;  %v1988_v18 = vadd.f32 %v1983_v30, %v1954_v62 }
 0x6ec   : > { %v2024_v38 = vadd.f32 %v2009_v60, %v1995_v7  ;;  %v2025_v2 = vadd.f32 %v2016_v52, %v1996_v9 }
 0x6ed   : > { %v2015_v57 = vpop.permute.xlu1 %2014  ;;  %v2026_v37 = vadd.f32 %v2017_v20, %v1997_v19  ;;  %v1999_v41 = vadd.f32 %v1993_v55, %v1988_v18 }
 0x6ee   : > { %2034 = vrot.lane.b32.xlu0 %v2024_v38, %s2741_s27  ;;  %v2018_v40 = vsel %vm1046_vm2, %v2013_v42, %v2015_v57  ;;  %2036 = vrot.lane.b32.xlu1 %v2025_v2, %s2741_s27 }
 0x6ef   : > { %v2027_v35 = vadd.f32 %v2018_v40, %v1998_v36  ;;  %v2028_v10 = vadd.f32 %v2015_v57, %v1999_v41 }
 0x6f2   : > { %2038 = vrot.lane.b32.xlu0 %v2026_v37, %s2741_s27  ;;  %2040 = vrot.lane.b32.xlu1 %v2027_v35, %s2741_s27 }
 0x6f6   : > { %2042 = vrot.lane.b32.xlu0 %v2028_v10, %s2741_s27 }
 0x760   : > { %v2035_v54 = vpop.permute.xlu0 %2034  ;;  %v2037_v43 = vpop.permute.xlu1 %2036 }
 0x761   : > { %v2044_v13 = vsel %vm418_vm1, %v2035_v54, %v2037_v43 }
 0x762   : > { %2052 = vst [vmem:[%s395_s10] sm:$0xff] %v2044_v13 }
 0x764   : > { %v2039_v56 = vpop.permute.xlu0 %2038  ;;  %v2041_v24 = vpop.permute.xlu1 %2040 }
 0x765   : > { %v2045_v33 = vsel %vm418_vm1, %v2037_v43, %v2039_v56  ;;  %v2046_v59 = vsel %vm418_vm1, %v2039_v56, %v2041_v24 }
 0x766   : > { %2053 = vst [vmem:[%s395_s10 + $0x8] sm:$0xff] %v2045_v33  ;;  %2054 = vst [vmem:[%s395_s10 + $0x10] sm:$0xff] %v2046_v59 }
 0x768   : > { %v2043_v44 = vpop.permute.xlu0 %2042 }
 0x769   : > { %v2047_v0 = vsel %vm418_vm1, %v2041_v24, %v2043_v44 }
 0x76a   : > { %2055 = vst [vmem:[%s395_s10 + $0x18] sm:$0xff] %v2047_v0 }
 0x76b   : > { %2558 = shalt.err (!%p2555_p1)
}
 0x76c   : > { %s2559_s15 = scalar_lea.hbm %s3997_s24, 512  ;;  %s2563_s1 = scalar_lea.hbm %s4285_s13, 3072 }
 0x76d   : > { %p2560_p9 = scmp.ne.s32.totalorder %s3997_s24, %s2559_s15  ;;  %p2564_p8 = scmp.lt.u32.totalorder %s3997_s24, %s4285_s13 }
 0x76e   : > { %p2565_p12 = scmp.lt.u32.totalorder %s2563_s1, %s2559_s15  ;;  %p2567_p4 = scmp.lt.u32.totalorder %s2559_s15, %s3997_s24 }
 0x76f   : > { %p2561_p0 = pnand %p2560_p9, %p4286_p13 }
 0x770   : > { %p2566_p11 = por %p2565_p12, %p2564_p8 }
 0x771   : > { %p2562_p3 = pneg %p2561_p0 }
 0x772   : > { %p2568_p5 = por %p2567_p4, %p2566_p11 }
 0x774   : > { %p2569_p6 = pnand %p2568_p5, %p2562_p3 }
 0x776   : > { %2572 = shalt.err (!%p2569_p6)
}
 0x777   : > { %2236 = dma.vmem_to_hbm [thread:$0]  (%p4286_p13), %s3999_s21, 512, %s3997_s24, %s2057_s30  }
 0x778 PF: > { %s4287_s27 = sld [smem:[#allocation14_spill]]  ;;  %p2253_p10 = scmp.ge.s32.totalorder %s2671_s11, 2 }
 0x779   : > { %p4288_p2 = scmp.ne.s32.totalorder %s4161_s22, 0 }
 0x77b   : > { %p2249_p7 = pnand %p2253_p10, %p4288_p2 }
 0x77e   : > { %s2085_s8 = sand.u32 1, %s4287_s27  }
 0x77f   : > { %s2086_s29 = scalar_lea.sflag [#allocation5], %s2085_s8 }
 0x780   : > { %2626 = dma.done.wait (!%p2249_p7), %s2086_s29, 512  }
 0x781   : > { %2628 = vsyncadd (!%p2249_p7), %s2086_s29, 4294966784  ;;  %s26_s11 = sadd.s32 1, %s2671_s11   ;;  %s4289_s10 = sld [smem:[#allocation13_spill]] }
 0x782   : > { %p23_p1 = scmp.ge.s32.totalorder %s26_s11, 8   ;;  %s4290_s26 = sld [smem:[#allocation22_spill]] }
 0x783   : > { %s4291_s7 = sld [smem:[#allocation15_spill]]  ;;  %s4292_s29 = sld [smem:[#allocation23_spill]] }
 0x784   : > { %s4293_s30 = sld [smem:[#allocation18_spill]]  ;;  %s4294_s8 = sld [smem:[#allocation19_spill]] }
 0x785   : > { %s4295_s9 = sld [smem:[#allocation20_spill]]  ;;  %s4296_s18 = sld [smem:[#allocation21_spill]] }
 0x786   : > { %s4297_s24 = smov %s2635_s25  ;;  %s4299_s27 = smov %s2647_s28 }
 0x787   : > { %s4298_s25 = smov %s4289_s10  ;;  %25 = sbr.rel (!%p23_p1) target bundleno = 16 (0x10), region = 117 }
 0x789   : > { %s4300_s28 = smov %s4291_s7 }
 0x78b   : > { %s4301_s10 = smov %s4296_s18 }
 0x78e   :  { %2091 = vsyncpa [#allocation4], 1 }
 0x78f   :  { %2093 = vsyncpa [#allocation4 + $0x1], 1 }
 0x790   :  { %2094 = vsyncpa [#allocation7], 1 }
 0x791   :  { %2096 = vsyncpa [#allocation7 + $0x1], 1 }
 0x792   :  { %2097 = vsyncpa [#allocation5], 1 }
 0x793   :  { %2099 = vsyncpa [#allocation5 + $0x1], 1 }

</bundles_post_ra>
